<compile_context>
chip_gen: v6e
topology: v6e:2x2x1
jax: 0.10.0
libtpu: 0.0.40
codegen_flags: <defaults>
</compile_context>

<pallas_src>
import functools
import math

import jax
import jax.numpy as jnp
from jax.experimental import pallas as pl
from jax.experimental.pallas import tpu as pltpu

# ----------------------------- config (small) --------------------------------
B = 2              # batch
S = 8              # sequence length
D = 32             # d_model
H = 4              # nhead
HD = D // H        # head dim
DFF = D * 1        # dim_feedforward = d_model * 1 (per module __init__)
NUM_LAYERS = 2
VOCAB = 50
VOCAB_PAD = 64     # pad vocab rows for the one-hot contraction (zero rows unused)
LN_EPS = 1e-5
NEG_INF = -1e9

# rows of the packed per-layer "small vector" slab
_BO, _B1, _B2, _LN1W, _LN1B, _LN2W, _LN2B = range(7)


# ------------------------------ shared math -----------------------------------
def _layernorm(x, w, b):
    mu = jnp.mean(x, axis=-1, keepdims=True)
    xc = x - mu
    var = jnp.mean(xc * xc, axis=-1, keepdims=True)
    return xc * jax.lax.rsqrt(var + LN_EPS) * w + b


# ----------------------------- Pallas kernel ----------------------------------
def text_encoder_kernel(ids_ref, emb_ref, pe_ref, *refs,
                        num_layers, nhead, use_bias):
    if use_bias:
        (bias_ref, wqk_ref, bqk_ref, wvo_ref,
         w1_ref, w2_ref, vecs_ref, out_ref) = refs
        bias = bias_ref[0]                                    # (S, S) f32
    else:
        (wqk_ref, bqk_ref, wvo_ref,
         w1_ref, w2_ref, vecs_ref, out_ref) = refs
        bias = None

    seq, d_model = out_ref.shape
    hd = d_model // nhead
    hhd = nhead * hd                                          # == d_model here

    # ---- embedding lookup (one-hot matmul on the MXU) + positional encoding ----
    ids = ids_ref[...]                                        # (S, 1) int32
    vocab_iota = jax.lax.broadcasted_iota(jnp.int32, (seq, emb_ref.shape[0]), 1)
    onehot = (vocab_iota == ids).astype(jnp.bfloat16)         # (S, Vpad)
    x = jnp.dot(onehot, emb_ref[...],
                preferred_element_type=jnp.float32) + pe_ref[...]
    # dropout is identity in eval mode.

    for l in range(num_layers):                               # static unroll
        xb = x.astype(jnp.bfloat16)

        # ---- fused, lane-dense projections (scale & q/k biases pre-folded) ----
        qk = jnp.dot(xb, wqk_ref[l],
                     preferred_element_type=jnp.float32) + bqk_ref[l]   # (S, 2*H*hd)
        vp = jnp.dot(xb, wvo_ref[l],
                     preferred_element_type=jnp.float32)                # (S, H*D)

        # static lane slices -> (H, S, hd) / (H, S, D) head-batched stacks
        q = jnp.stack([qk[:, h * hd:(h + 1) * hd]
                       for h in range(nhead)], 0).astype(jnp.bfloat16)
        k = jnp.stack([qk[:, hhd + h * hd:hhd + (h + 1) * hd]
                       for h in range(nhead)], 0).astype(jnp.bfloat16)
        v = jnp.stack([vp[:, h * d_model:(h + 1) * d_model]
                       for h in range(nhead)], 0).astype(jnp.bfloat16)

        # ---- head-batched attention (softmax kept in f32) ----
        s = jnp.einsum('hqd,hkd->hqk', q, k,
                       preferred_element_type=jnp.float32)              # (H, S, S)
        if bias is not None:
            s = s + bias[None]
        s = s - jnp.max(s, axis=-1, keepdims=True)
        p = jnp.exp(s)
        p = p * pl.reciprocal(jnp.sum(p, axis=-1, keepdims=True), approx=True)

        # V/output projections are pre-folded into Wvo, so the per-head context
        # already lives in model space; summing heads finishes the MHA output.
        ctx = jnp.einsum('hqk,hkd->hqd', p.astype(jnp.bfloat16), v,
                         preferred_element_type=jnp.float32)            # (H, S, D)
        attn = ctx[0]
        for h in range(1, nhead):
            attn = attn + ctx[h]
        attn = attn + vecs_ref[l, _BO:_BO + 1, :]

        # ---- residual + norm1 (post-norm) ----
        x = _layernorm(x + attn,
                       vecs_ref[l, _LN1W:_LN1W + 1, :],
                       vecs_ref[l, _LN1B:_LN1B + 1, :])

        # ---- feed-forward (ReLU) ----
        h1 = jnp.dot(x.astype(jnp.bfloat16), w1_ref[l],
                     preferred_element_type=jnp.float32) + vecs_ref[l, _B1:_B1 + 1, :]
        h1 = jnp.maximum(h1, 0.0)
        ff = jnp.dot(h1.astype(jnp.bfloat16), w2_ref[l],
                     preferred_element_type=jnp.float32) + vecs_ref[l, _B2:_B2 + 1, :]

        # ---- residual + norm2 ----
        x = _layernorm(x + ff,
                       vecs_ref[l, _LN2W:_LN2W + 1, :],
                       vecs_ref[l, _LN2B:_LN2B + 1, :])

    out_ref[...] = x


# --------------------------------- wrapper -------------------------------------
def _resident(arr):
    """Whole array resident in VMEM across all grid steps (weights / tables)."""
    return pl.BlockSpec(arr.shape, lambda b, _n=arr.ndim: (0,) * _n)


def text_encoder_forward(src, kp, mask=None, attention_mask=None):
    """src: (B, S) int token ids. Returns (B, S, D) float32 (eval mode)."""
    bsz, slen = src.shape
    d_model = kp["pe"].shape[-1]
    ids = src.reshape(bsz * slen, 1).astype(jnp.int32)

    use_bias = (mask is not None) or (attention_mask is not None)

    inputs = [ids, kp["emb"], kp["pe"]]
    in_specs = [pl.BlockSpec((slen, 1), lambda b: (b, 0)),
                _resident(kp["emb"]),
                _resident(kp["pe"])]

    if use_bias:
        # small per-sequence (S, S) additive bias; no block-diagonal construction.
        bias = jnp.zeros((bsz, slen, slen), jnp.float32)
        if mask is not None:                      # attn mask (S, S), bool or additive
            m = jnp.asarray(mask)
            if m.dtype == jnp.bool_:
                m = jnp.where(m, NEG_INF, 0.0)
            bias = bias + m.astype(jnp.float32)[None, :, :]
        if attention_mask is not None:            # key-padding mask (B, S), True = ignore
            kpm = jnp.asarray(attention_mask, bool)
            bias = bias + jnp.where(kpm, NEG_INF, 0.0).astype(jnp.float32)[:, None, :]
        inputs.append(bias)
        in_specs.append(pl.BlockSpec((1, slen, slen), lambda b: (b, 0, 0)))

    for name in ("wqk", "bqk", "wvo", "w1", "w2", "vecs"):
        inputs.append(kp[name])
        in_specs.append(_resident(kp[name]))

    kern = functools.partial(text_encoder_kernel, num_layers=NUM_LAYERS,
                             nhead=H, use_bias=use_bias)

    out = pl.pallas_call(
        kern,
        out_shape=jax.ShapeDtypeStruct((bsz * slen, d_model), jnp.float32),
        grid=(bsz,),
        in_specs=in_specs,
        out_specs=pl.BlockSpec((slen, d_model), lambda b: (b, 0)),
        compiler_params=pltpu.CompilerParams(
            dimension_semantics=("parallel",)),
    )(*inputs)
    return out.reshape(bsz, slen, d_model)


# ----------------------------- glue / params -----------------------------------
def sinusoidal_pe(max_len, d_model):
    pos = jnp.arange(max_len, dtype=jnp.float32)[:, None]
    div = jnp.exp(jnp.arange(0, d_model, 2, dtype=jnp.float32)
                  * (-math.log(10000.0) / d_model))
    pe = jnp.zeros((max_len, d_model), jnp.float32)
    pe = pe.at[:, 0::2].set(jnp.sin(pos * div))
    pe = pe.at[:, 1::2].set(jnp.cos(pos * div))
    return pe


def init_params(key):
    """Logical (per-head, f32) parameters — what the PyTorch module holds."""
    ks = jax.random.split(key, 1 + NUM_LAYERS)
    params = {"emb": 0.02 * jax.random.normal(ks[0], (VOCAB, D), jnp.float32),
              "pe": sinusoidal_pe(S, D)}
    names = ("wq", "wk", "wv", "bq", "bk", "bv", "wo", "bo",
             "w1", "b1", "w2", "b2", "ln1w", "ln1b", "ln2w", "ln2b")
    per_layer = {n: [] for n in names}
    for l in range(NUM_LAYERS):
        kk = jax.random.split(ks[1 + l], 12)
        per_layer["wq"].append(0.02 * jax.random.normal(kk[0], (H, D, HD)))
        per_layer["wk"].append(0.02 * jax.random.normal(kk[1], (H, D, HD)))
        per_layer["wv"].append(0.02 * jax.random.normal(kk[2], (H, D, HD)))
        per_layer["bq"].append(0.02 * jax.random.normal(kk[3], (H, HD)))
        per_layer["bk"].append(0.02 * jax.random.normal(kk[4], (H, HD)))
        per_layer["bv"].append(0.02 * jax.random.normal(kk[5], (H, HD)))
        per_layer["wo"].append(0.02 * jax.random.normal(kk[6], (H, HD, D)))
        per_layer["bo"].append(0.02 * jax.random.normal(kk[7], (D,)))
        per_layer["w1"].append(0.02 * jax.random.normal(kk[8], (D, DFF)))
        per_layer["b1"].append(0.02 * jax.random.normal(kk[9], (DFF,)))
        per_layer["w2"].append(0.02 * jax.random.normal(kk[10], (DFF, D)))
        per_layer["b2"].append(0.02 * jax.random.normal(kk[11], (D,)))
        per_layer["ln1w"].append(jnp.ones((D,), jnp.float32))
        per_layer["ln1b"].append(jnp.zeros((D,), jnp.float32))
        per_layer["ln2w"].append(jnp.ones((D,), jnp.float32))
        per_layer["ln2b"].append(jnp.zeros((D,), jnp.float32))
    for n, lst in per_layer.items():
        params[n] = jnp.stack(lst, 0).astype(jnp.float32)
    return params


def pack_params(p):
    """Fold scale / biases / Wv@Wo offline and pack lane-dense bf16 weight stacks."""
    # TODO(synk): the packed `vecs` slab assumes dim_feedforward == d_model
    # (true here: d_model * 1); split b1 into its own slab if that changes.
    assert DFF == D
    scale = 1.0 / math.sqrt(HD)
    emb = jnp.zeros((VOCAB_PAD, D), jnp.float32).at[:VOCAB].set(p["emb"])
    wqk, bqk, wvo, w1, w2, vecs = [], [], [], [], [], []
    for l in range(NUM_LAYERS):
        wq = p["wq"][l] * scale                            # (H, D, HD) scaled
        bq = p["bq"][l] * scale                            # (H, HD)    scaled
        wq2 = jnp.transpose(wq, (1, 0, 2)).reshape(D, H * HD)
        wk2 = jnp.transpose(p["wk"][l], (1, 0, 2)).reshape(D, H * HD)
        wqk.append(jnp.concatenate([wq2, wk2], axis=1))    # (D, 2*H*HD)
        bqk.append(jnp.concatenate([bq.reshape(1, H * HD),
                                    p["bk"][l].reshape(1, H * HD)], axis=1))
        # Wvo_h = Wv_h @ Wo_h (exact: associativity); bv folds into bo since
        # softmax rows sum to 1.
        wvo_h = jnp.einsum('hdk,hke->hde', p["wv"][l], p["wo"][l])   # (H, D, D)
        wvo.append(jnp.transpose(wvo_h, (1, 0, 2)).reshape(D, H * D))
        bo_eff = p["bo"][l] + jnp.einsum('hk,hke->e', p["bv"][l], p["wo"][l])
        w1.append(p["w1"][l])
        w2.append(p["w2"][l])
        vecs.append(jnp.stack([bo_eff, p["b1"][l], p["b2"][l],
                               p["ln1w"][l], p["ln1b"][l],
                               p["ln2w"][l], p["ln2b"][l],
                               jnp.zeros((D,), jnp.float32)], axis=0))  # (8, D)
    return {
        "emb": emb.astype(jnp.bfloat16),
        "pe": p["pe"].astype(jnp.float32),
        "wqk": jnp.stack(wqk).astype(jnp.bfloat16),
        "bqk": jnp.stack(bqk).astype(jnp.float32),
        "wvo": jnp.stack(wvo).astype(jnp.bfloat16),
        "w1": jnp.stack(w1).astype(jnp.bfloat16),
        "w2": jnp.stack(w2).astype(jnp.bfloat16),
        "vecs": jnp.stack(vecs).astype(jnp.float32),
    }


# ------------------------- pure-JAX reference -----------------------------------
def reference_forward(src, p, mask=None, attention_mask=None):
    x = jnp.take(p["emb"], src, axis=0) + p["pe"][None, :src.shape[1]]
    for l in range(NUM_LAYERS):
        attn = jnp.zeros_like(x)
        for h in range(H):
            q = x @ p["wq"][l, h] + p["bq"][l, h]
            k = x @ p["wk"][l, h] + p["bk"][l, h]
            v = x @ p["wv"][l, h] + p["bv"][l, h]
            s = jnp.einsum("bqd,bkd->bqk", q, k) / math.sqrt(HD)
            if mask is not None:
                m = jnp.asarray(mask)
                if m.dtype == jnp.bool_:
                    m = jnp.where(m, NEG_INF, 0.0)
                s = s + m.astype(jnp.float32)[None]
            if attention_mask is not None:
                s = s + jnp.where(jnp.asarray(attention_mask, bool),
                                  NEG_INF, 0.0)[:, None, :]
            pr = jax.nn.softmax(s, axis=-1)
            attn = attn + jnp.einsum("bqk,bkd->bqd", pr, v) @ p["wo"][l, h]
        attn = attn + p["bo"][l]
        x = _layernorm(x + attn, p["ln1w"][l], p["ln1b"][l])
        h1 = jnp.maximum(x @ p["w1"][l] + p["b1"][l], 0.0)
        ff = h1 @ p["w2"][l] + p["b2"][l]
        x = _layernorm(x + ff, p["ln2w"][l], p["ln2b"][l])
    return x


# ----------------------------------- main ---------------------------------------
if __name__ == "__main__":
    key = jax.random.PRNGKey(0)
    pkey, dkey = jax.random.split(key)
    params = init_params(pkey)
    kparams = pack_params(params)
    src = jax.random.randint(dkey, (B, S), 0, VOCAB, dtype=jnp.int32)

    fwd = jax.jit(text_encoder_forward)

    # no-mask path
    out = jax.block_until_ready(fwd(src, kparams))
    assert out.shape == (B, S, D) and out.dtype == jnp.float32
    assert bool(jnp.all(jnp.isfinite(out)))
    ref = reference_forward(src, params)
    err = float(jnp.max(jnp.abs(out - ref)))
    assert err < 2e-2, f"no-mask mismatch vs reference: {err}"

    # key-padding-mask path (last two keys of sequence 1 ignored)
    attn_mask = jnp.zeros((B, S), bool).at[1, -2:].set(True)
    out_m = jax.block_until_ready(fwd(src, kparams, attention_mask=attn_mask))
    assert bool(jnp.all(jnp.isfinite(out_m)))
    ref_m = reference_forward(src, params, attention_mask=attn_mask)
    err_m = float(jnp.max(jnp.abs(out_m - ref_m)))
    assert err_m < 2e-2, f"masked mismatch vs reference: {err_m}"

    print("KERNEL_OK")
</pallas_src>

<mosaic_0001>
module attributes {stable_mosaic.version = 11 : i64} {
  func.func @text_encoder_kernel(%arg0: i32, %arg1: memref<8x1xi32, #tpu.memory_space<vmem>>, %arg2: memref<64x32xbf16, #tpu.memory_space<vmem>>, %arg3: memref<8x32xf32, #tpu.memory_space<vmem>>, %arg4: memref<2x32x64xbf16, #tpu.memory_space<vmem>>, %arg5: memref<2x1x64xf32, #tpu.memory_space<vmem>>, %arg6: memref<2x32x128xbf16, #tpu.memory_space<vmem>>, %arg7: memref<2x32x32xbf16, #tpu.memory_space<vmem>>, %arg8: memref<2x32x32xbf16, #tpu.memory_space<vmem>>, %arg9: memref<2x8x32xf32, #tpu.memory_space<vmem>>, %arg10: memref<8x32xf32, #tpu.memory_space<vmem>>) attributes {dimension_semantics = [#tpu.dimension_semantics<parallel>], iteration_bounds = array<i64: 2>, scalar_prefetch = 0 : i64, scratch_operands = 0 : i64, tpu.core_type = #tpu.core_type<tc>, window_params = [{transform_indices = @transform_0, window_bounds = array<i64: 8, 1>}, {pipeline_mode = #tpu.pipeline_mode<synchronous>, transform_indices = @transform_1, window_bounds = array<i64: 64, 32>}, {pipeline_mode = #tpu.pipeline_mode<synchronous>, transform_indices = @transform_2, window_bounds = array<i64: 8, 32>}, {pipeline_mode = #tpu.pipeline_mode<synchronous>, transform_indices = @transform_3, window_bounds = array<i64: 2, 32, 64>}, {pipeline_mode = #tpu.pipeline_mode<synchronous>, transform_indices = @transform_4, window_bounds = array<i64: 2, 1, 64>}, {pipeline_mode = #tpu.pipeline_mode<synchronous>, transform_indices = @transform_5, window_bounds = array<i64: 2, 32, 128>}, {pipeline_mode = #tpu.pipeline_mode<synchronous>, transform_indices = @transform_6, window_bounds = array<i64: 2, 32, 32>}, {pipeline_mode = #tpu.pipeline_mode<synchronous>, transform_indices = @transform_7, window_bounds = array<i64: 2, 32, 32>}, {pipeline_mode = #tpu.pipeline_mode<synchronous>, transform_indices = @transform_8, window_bounds = array<i64: 2, 8, 32>}, {transform_indices = @transform_9, window_bounds = array<i64: 8, 32>}]} {
    %c0 = arith.constant 0 : index
    %c0_0 = arith.constant 0 : index
    %0 = vector.load %arg1[%c0, %c0_0] : memref<8x1xi32, #tpu.memory_space<vmem>>, vector<8x1xi32>
    %1 = tpu.iota {dimensions = array<i32: 1>} : vector<8x64xi32>
    %2 = vector.broadcast %0 : vector<8x1xi32> to vector<8x64xi32>
    %3 = arith.cmpi eq, %1, %2 : vector<8x64xi32>
    %4 = arith.extui %3 : vector<8x64xi1> to vector<8x64xi32>
    %5 = arith.sitofp %4 : vector<8x64xi32> to vector<8x64xf32>
    %6 = arith.truncf %5 : vector<8x64xf32> to vector<8x64xbf16>
    %c0_1 = arith.constant 0 : index
    %c0_2 = arith.constant 0 : index
    %7 = vector.load %arg2[%c0_1, %c0_2] : memref<64x32xbf16, #tpu.memory_space<vmem>>, vector<64x32xbf16>
    %cst = arith.constant dense<0.000000e+00> : vector<8x32xf32>
    %8 = tpu.matmul %6, %7, %cst {dimension_numbers = #tpu.dot_dimension_numbers<[1], [0], [0], [1], [0, 0, 1, 1], [], []>} : vector<8x64xbf16>, vector<64x32xbf16>, vector<8x32xf32> -> vector<8x32xf32>
    %c0_3 = arith.constant 0 : index
    %c0_4 = arith.constant 0 : index
    %9 = vector.load %arg3[%c0_3, %c0_4] : memref<8x32xf32, #tpu.memory_space<vmem>>, vector<8x32xf32>
    %10 = arith.addf %8, %9 : vector<8x32xf32>
    %11 = arith.truncf %10 : vector<8x32xf32> to vector<8x32xbf16>
    %c0_5 = arith.constant 0 : index
    %c0_6 = arith.constant 0 : index
    %c0_7 = arith.constant 0 : index
    %12 = vector.load %arg4[%c0_5, %c0_6, %c0_7] : memref<2x32x64xbf16, #tpu.memory_space<vmem>>, vector<1x32x64xbf16>
    %13 = vector.shape_cast %12 : vector<1x32x64xbf16> to vector<32x64xbf16>
    %cst_8 = arith.constant dense<0.000000e+00> : vector<8x64xf32>
    %14 = tpu.matmul %11, %13, %cst_8 {dimension_numbers = #tpu.dot_dimension_numbers<[1], [0], [0], [1], [0, 0, 1, 1], [], []>} : vector<8x32xbf16>, vector<32x64xbf16>, vector<8x64xf32> -> vector<8x64xf32>
    %c0_9 = arith.constant 0 : index
    %c0_10 = arith.constant 0 : index
    %c0_11 = arith.constant 0 : index
    %15 = vector.load %arg5[%c0_9, %c0_10, %c0_11] : memref<2x1x64xf32, #tpu.memory_space<vmem>>, vector<1x1x64xf32>
    %16 = vector.shape_cast %15 : vector<1x1x64xf32> to vector<1x64xf32>
    %17 = vector.broadcast %16 : vector<1x64xf32> to vector<8x64xf32>
    %18 = arith.addf %14, %17 : vector<8x64xf32>
    %c0_12 = arith.constant 0 : index
    %c0_13 = arith.constant 0 : index
    %c0_14 = arith.constant 0 : index
    %19 = vector.load %arg6[%c0_12, %c0_13, %c0_14] : memref<2x32x128xbf16, #tpu.memory_space<vmem>>, vector<1x32x128xbf16>
    %20 = vector.shape_cast %19 : vector<1x32x128xbf16> to vector<32x128xbf16>
    %cst_15 = arith.constant dense<0.000000e+00> : vector<8x128xf32>
    %21 = tpu.matmul %11, %20, %cst_15 {dimension_numbers = #tpu.dot_dimension_numbers<[1], [0], [0], [1], [0, 0, 1, 1], [], []>} : vector<8x32xbf16>, vector<32x128xbf16>, vector<8x128xf32> -> vector<8x128xf32>
    %22 = vector.extract_strided_slice %18 {offsets = [0, 0], sizes = [8, 8], strides = [1, 1]} : vector<8x64xf32> to vector<8x8xf32>
    %23 = vector.extract_strided_slice %18 {offsets = [0, 8], sizes = [8, 8], strides = [1, 1]} : vector<8x64xf32> to vector<8x8xf32>
    %24 = vector.extract_strided_slice %18 {offsets = [0, 16], sizes = [8, 8], strides = [1, 1]} : vector<8x64xf32> to vector<8x8xf32>
    %25 = vector.extract_strided_slice %18 {offsets = [0, 24], sizes = [8, 8], strides = [1, 1]} : vector<8x64xf32> to vector<8x8xf32>
    %26 = vector.shape_cast %22 : vector<8x8xf32> to vector<1x8x8xf32>
    %27 = vector.shape_cast %23 : vector<8x8xf32> to vector<1x8x8xf32>
    %28 = vector.shape_cast %24 : vector<8x8xf32> to vector<1x8x8xf32>
    %29 = vector.shape_cast %25 : vector<8x8xf32> to vector<1x8x8xf32>
    %30 = tpu.concatenate %26, %27, %28, %29 in 0 : vector<1x8x8xf32>, vector<1x8x8xf32>, vector<1x8x8xf32>, vector<1x8x8xf32> -> vector<4x8x8xf32>
    %31 = arith.truncf %30 : vector<4x8x8xf32> to vector<4x8x8xbf16>
    %32 = vector.extract_strided_slice %18 {offsets = [0, 32], sizes = [8, 8], strides = [1, 1]} : vector<8x64xf32> to vector<8x8xf32>
    %33 = vector.extract_strided_slice %18 {offsets = [0, 40], sizes = [8, 8], strides = [1, 1]} : vector<8x64xf32> to vector<8x8xf32>
    %34 = vector.extract_strided_slice %18 {offsets = [0, 48], sizes = [8, 8], strides = [1, 1]} : vector<8x64xf32> to vector<8x8xf32>
    %35 = vector.extract_strided_slice %18 {offsets = [0, 56], sizes = [8, 8], strides = [1, 1]} : vector<8x64xf32> to vector<8x8xf32>
    %36 = vector.shape_cast %32 : vector<8x8xf32> to vector<1x8x8xf32>
    %37 = vector.shape_cast %33 : vector<8x8xf32> to vector<1x8x8xf32>
    %38 = vector.shape_cast %34 : vector<8x8xf32> to vector<1x8x8xf32>
    %39 = vector.shape_cast %35 : vector<8x8xf32> to vector<1x8x8xf32>
    %40 = tpu.concatenate %36, %37, %38, %39 in 0 : vector<1x8x8xf32>, vector<1x8x8xf32>, vector<1x8x8xf32>, vector<1x8x8xf32> -> vector<4x8x8xf32>
    %41 = arith.truncf %40 : vector<4x8x8xf32> to vector<4x8x8xbf16>
    %42 = vector.extract_strided_slice %21 {offsets = [0, 0], sizes = [8, 32], strides = [1, 1]} : vector<8x128xf32> to vector<8x32xf32>
    %43 = vector.extract_strided_slice %21 {offsets = [0, 32], sizes = [8, 32], strides = [1, 1]} : vector<8x128xf32> to vector<8x32xf32>
    %44 = vector.extract_strided_slice %21 {offsets = [0, 64], sizes = [8, 32], strides = [1, 1]} : vector<8x128xf32> to vector<8x32xf32>
    %45 = vector.extract_strided_slice %21 {offsets = [0, 96], sizes = [8, 32], strides = [1, 1]} : vector<8x128xf32> to vector<8x32xf32>
    %46 = vector.shape_cast %42 : vector<8x32xf32> to vector<1x8x32xf32>
    %47 = vector.shape_cast %43 : vector<8x32xf32> to vector<1x8x32xf32>
    %48 = vector.shape_cast %44 : vector<8x32xf32> to vector<1x8x32xf32>
    %49 = vector.shape_cast %45 : vector<8x32xf32> to vector<1x8x32xf32>
    %50 = tpu.concatenate %46, %47, %48, %49 in 0 : vector<1x8x32xf32>, vector<1x8x32xf32>, vector<1x8x32xf32>, vector<1x8x32xf32> -> vector<4x8x32xf32>
    %51 = arith.truncf %50 : vector<4x8x32xf32> to vector<4x8x32xbf16>
    "tpu.trace_start"() <{level = 10 : i32, message = "hqd,hkd->hqk"}> : () -> ()
    %cst_16 = arith.constant dense<0.000000e+00> : vector<4x8x8xf32>
    %52 = tpu.matmul %31, %41, %cst_16 {dimension_numbers = #tpu.dot_dimension_numbers<[2], [2], [1], [1], [0, 0, 0, 1, 1, 1], [0], [0]>} : vector<4x8x8xbf16>, vector<4x8x8xbf16>, vector<4x8x8xf32> -> vector<4x8x8xf32>
    "tpu.trace_stop"() : () -> ()
    %cst_17 = arith.constant dense<0xFF800000> : vector<4x8xf32>
    %53 = vector.multi_reduction <maximumf>, %52, %cst_17 [2] : vector<4x8x8xf32> to vector<4x8xf32>
    %54 = vector.shape_cast %53 : vector<4x8xf32> to vector<4x8x1xf32>
    %55 = vector.broadcast %54 : vector<4x8x1xf32> to vector<4x8x8xf32>
    %56 = arith.subf %52, %55 : vector<4x8x8xf32>
    %57 = math.exp %56 : vector<4x8x8xf32>
    %cst_18 = arith.constant dense<0.000000e+00> : vector<4x8xf32>
    %58 = vector.multi_reduction <add>, %57, %cst_18 [2] : vector<4x8x8xf32> to vector<4x8xf32>
    %59 = vector.shape_cast %58 : vector<4x8xf32> to vector<4x8x1xf32>
    %60 = tpu.reciprocal %59 {approx = true} : vector<4x8x1xf32> -> vector<4x8x1xf32>
    %61 = vector.broadcast %60 : vector<4x8x1xf32> to vector<4x8x8xf32>
    %62 = arith.mulf %57, %61 : vector<4x8x8xf32>
    %63 = arith.truncf %62 : vector<4x8x8xf32> to vector<4x8x8xbf16>
    "tpu.trace_start"() <{level = 10 : i32, message = "hqk,hkd->hqd"}> : () -> ()
    %cst_19 = arith.constant dense<0.000000e+00> : vector<4x8x32xf32>
    %64 = tpu.matmul %63, %51, %cst_19 {dimension_numbers = #tpu.dot_dimension_numbers<[2], [1], [1], [2], [0, 0, 0, 1, 1, 2], [0], [0]>} : vector<4x8x8xbf16>, vector<4x8x32xbf16>, vector<4x8x32xf32> -> vector<4x8x32xf32>
    "tpu.trace_stop"() : () -> ()
    %65 = vector.extract_strided_slice %64 {offsets = [0, 0, 0], sizes = [1, 8, 32], strides = [1, 1, 1]} : vector<4x8x32xf32> to vector<1x8x32xf32>
    %66 = vector.shape_cast %65 : vector<1x8x32xf32> to vector<8x32xf32>
    %67 = vector.extract_strided_slice %64 {offsets = [1, 0, 0], sizes = [1, 8, 32], strides = [1, 1, 1]} : vector<4x8x32xf32> to vector<1x8x32xf32>
    %68 = vector.shape_cast %67 : vector<1x8x32xf32> to vector<8x32xf32>
    %69 = arith.addf %66, %68 : vector<8x32xf32>
    %70 = vector.extract_strided_slice %64 {offsets = [2, 0, 0], sizes = [1, 8, 32], strides = [1, 1, 1]} : vector<4x8x32xf32> to vector<1x8x32xf32>
    %71 = vector.shape_cast %70 : vector<1x8x32xf32> to vector<8x32xf32>
    %72 = arith.addf %69, %71 : vector<8x32xf32>
    %73 = vector.extract_strided_slice %64 {offsets = [3, 0, 0], sizes = [1, 8, 32], strides = [1, 1, 1]} : vector<4x8x32xf32> to vector<1x8x32xf32>
    %74 = vector.shape_cast %73 : vector<1x8x32xf32> to vector<8x32xf32>
    %75 = arith.addf %72, %74 : vector<8x32xf32>
    %c0_20 = arith.constant 0 : index
    %c0_21 = arith.constant 0 : index
    %c0_22 = arith.constant 0 : index
    %76 = vector.load %arg9[%c0_20, %c0_21, %c0_22] : memref<2x8x32xf32, #tpu.memory_space<vmem>>, vector<1x1x32xf32>
    %77 = vector.shape_cast %76 : vector<1x1x32xf32> to vector<1x32xf32>
    %78 = vector.broadcast %77 : vector<1x32xf32> to vector<8x32xf32>
    %79 = arith.addf %75, %78 : vector<8x32xf32>
    %80 = arith.addf %10, %79 : vector<8x32xf32>
    %c0_23 = arith.constant 0 : index
    %c3 = arith.constant 3 : index
    %c0_24 = arith.constant 0 : index
    %81 = vector.load %arg9[%c0_23, %c3, %c0_24] : memref<2x8x32xf32, #tpu.memory_space<vmem>>, vector<1x1x32xf32>
    %82 = vector.shape_cast %81 : vector<1x1x32xf32> to vector<1x32xf32>
    %c0_25 = arith.constant 0 : index
    %c4 = arith.constant 4 : index
    %c0_26 = arith.constant 0 : index
    %83 = vector.load %arg9[%c0_25, %c4, %c0_26] : memref<2x8x32xf32, #tpu.memory_space<vmem>>, vector<1x1x32xf32>
    %84 = vector.shape_cast %83 : vector<1x1x32xf32> to vector<1x32xf32>
    %cst_27 = arith.constant dense<0.000000e+00> : vector<8xf32>
    %85 = vector.multi_reduction <add>, %80, %cst_27 [1] : vector<8x32xf32> to vector<8xf32>
    %86 = vector.shape_cast %85 : vector<8xf32> to vector<8x1xf32>
    %cst_28 = arith.constant 3.200000e+01 : f32
    %87 = vector.broadcast %cst_28 : f32 to vector<8x1xf32>
    %88 = arith.divf %86, %87 : vector<8x1xf32>
    %89 = vector.broadcast %88 : vector<8x1xf32> to vector<8x32xf32>
    %90 = arith.subf %80, %89 : vector<8x32xf32>
    %91 = arith.mulf %90, %90 : vector<8x32xf32>
    %cst_29 = arith.constant dense<0.000000e+00> : vector<8xf32>
    %92 = vector.multi_reduction <add>, %91, %cst_29 [1] : vector<8x32xf32> to vector<8xf32>
    %93 = vector.shape_cast %92 : vector<8xf32> to vector<8x1xf32>
    %cst_30 = arith.constant 3.200000e+01 : f32
    %94 = vector.broadcast %cst_30 : f32 to vector<8x1xf32>
    %95 = arith.divf %93, %94 : vector<8x1xf32>
    %cst_31 = arith.constant 9.99999974E-6 : f32
    %96 = vector.broadcast %cst_31 : f32 to vector<8x1xf32>
    %97 = arith.addf %95, %96 : vector<8x1xf32>
    %98 = math.rsqrt %97 : vector<8x1xf32>
    %99 = vector.broadcast %98 : vector<8x1xf32> to vector<8x32xf32>
    %100 = arith.mulf %90, %99 : vector<8x32xf32>
    %101 = vector.broadcast %82 : vector<1x32xf32> to vector<8x32xf32>
    %102 = arith.mulf %100, %101 : vector<8x32xf32>
    %103 = vector.broadcast %84 : vector<1x32xf32> to vector<8x32xf32>
    %104 = arith.addf %102, %103 : vector<8x32xf32>
    %105 = arith.truncf %104 : vector<8x32xf32> to vector<8x32xbf16>
    %c0_32 = arith.constant 0 : index
    %c0_33 = arith.constant 0 : index
    %c0_34 = arith.constant 0 : index
    %106 = vector.load %arg7[%c0_32, %c0_33, %c0_34] : memref<2x32x32xbf16, #tpu.memory_space<vmem>>, vector<1x32x32xbf16>
    %107 = vector.shape_cast %106 : vector<1x32x32xbf16> to vector<32x32xbf16>
    %cst_35 = arith.constant dense<0.000000e+00> : vector<8x32xf32>
    %108 = tpu.matmul %105, %107, %cst_35 {dimension_numbers = #tpu.dot_dimension_numbers<[1], [0], [0], [1], [0, 0, 1, 1], [], []>} : vector<8x32xbf16>, vector<32x32xbf16>, vector<8x32xf32> -> vector<8x32xf32>
    %c0_36 = arith.constant 0 : index
    %c1 = arith.constant 1 : index
    %c0_37 = arith.constant 0 : index
    %109 = vector.load %arg9[%c0_36, %c1, %c0_37] : memref<2x8x32xf32, #tpu.memory_space<vmem>>, vector<1x1x32xf32>
    %110 = vector.shape_cast %109 : vector<1x1x32xf32> to vector<1x32xf32>
    %111 = vector.broadcast %110 : vector<1x32xf32> to vector<8x32xf32>
    %112 = arith.addf %108, %111 : vector<8x32xf32>
    %cst_38 = arith.constant 0.000000e+00 : f32
    %113 = vector.broadcast %cst_38 : f32 to vector<8x32xf32>
    %114 = arith.maximumf %112, %113 : vector<8x32xf32>
    %115 = arith.truncf %114 : vector<8x32xf32> to vector<8x32xbf16>
    %c0_39 = arith.constant 0 : index
    %c0_40 = arith.constant 0 : index
    %c0_41 = arith.constant 0 : index
    %116 = vector.load %arg8[%c0_39, %c0_40, %c0_41] : memref<2x32x32xbf16, #tpu.memory_space<vmem>>, vector<1x32x32xbf16>
    %117 = vector.shape_cast %116 : vector<1x32x32xbf16> to vector<32x32xbf16>
    %cst_42 = arith.constant dense<0.000000e+00> : vector<8x32xf32>
    %118 = tpu.matmul %115, %117, %cst_42 {dimension_numbers = #tpu.dot_dimension_numbers<[1], [0], [0], [1], [0, 0, 1, 1], [], []>} : vector<8x32xbf16>, vector<32x32xbf16>, vector<8x32xf32> -> vector<8x32xf32>
    %c0_43 = arith.constant 0 : index
    %c2 = arith.constant 2 : index
    %c0_44 = arith.constant 0 : index
    %119 = vector.load %arg9[%c0_43, %c2, %c0_44] : memref<2x8x32xf32, #tpu.memory_space<vmem>>, vector<1x1x32xf32>
    %120 = vector.shape_cast %119 : vector<1x1x32xf32> to vector<1x32xf32>
    %121 = vector.broadcast %120 : vector<1x32xf32> to vector<8x32xf32>
    %122 = arith.addf %118, %121 : vector<8x32xf32>
    %123 = arith.addf %104, %122 : vector<8x32xf32>
    %c0_45 = arith.constant 0 : index
    %c5 = arith.constant 5 : index
    %c0_46 = arith.constant 0 : index
    %124 = vector.load %arg9[%c0_45, %c5, %c0_46] : memref<2x8x32xf32, #tpu.memory_space<vmem>>, vector<1x1x32xf32>
    %125 = vector.shape_cast %124 : vector<1x1x32xf32> to vector<1x32xf32>
    %c0_47 = arith.constant 0 : index
    %c6 = arith.constant 6 : index
    %c0_48 = arith.constant 0 : index
    %126 = vector.load %arg9[%c0_47, %c6, %c0_48] : memref<2x8x32xf32, #tpu.memory_space<vmem>>, vector<1x1x32xf32>
    %127 = vector.shape_cast %126 : vector<1x1x32xf32> to vector<1x32xf32>
    %cst_49 = arith.constant dense<0.000000e+00> : vector<8xf32>
    %128 = vector.multi_reduction <add>, %123, %cst_49 [1] : vector<8x32xf32> to vector<8xf32>
    %129 = vector.shape_cast %128 : vector<8xf32> to vector<8x1xf32>
    %cst_50 = arith.constant 3.200000e+01 : f32
    %130 = vector.broadcast %cst_50 : f32 to vector<8x1xf32>
    %131 = arith.divf %129, %130 : vector<8x1xf32>
    %132 = vector.broadcast %131 : vector<8x1xf32> to vector<8x32xf32>
    %133 = arith.subf %123, %132 : vector<8x32xf32>
    %134 = arith.mulf %133, %133 : vector<8x32xf32>
    %cst_51 = arith.constant dense<0.000000e+00> : vector<8xf32>
    %135 = vector.multi_reduction <add>, %134, %cst_51 [1] : vector<8x32xf32> to vector<8xf32>
    %136 = vector.shape_cast %135 : vector<8xf32> to vector<8x1xf32>
    %cst_52 = arith.constant 3.200000e+01 : f32
    %137 = vector.broadcast %cst_52 : f32 to vector<8x1xf32>
    %138 = arith.divf %136, %137 : vector<8x1xf32>
    %cst_53 = arith.constant 9.99999974E-6 : f32
    %139 = vector.broadcast %cst_53 : f32 to vector<8x1xf32>
    %140 = arith.addf %138, %139 : vector<8x1xf32>
    %141 = math.rsqrt %140 : vector<8x1xf32>
    %142 = vector.broadcast %141 : vector<8x1xf32> to vector<8x32xf32>
    %143 = arith.mulf %133, %142 : vector<8x32xf32>
    %144 = vector.broadcast %125 : vector<1x32xf32> to vector<8x32xf32>
    %145 = arith.mulf %143, %144 : vector<8x32xf32>
    %146 = vector.broadcast %127 : vector<1x32xf32> to vector<8x32xf32>
    %147 = arith.addf %145, %146 : vector<8x32xf32>
    %148 = arith.truncf %147 : vector<8x32xf32> to vector<8x32xbf16>
    %c1_54 = arith.constant 1 : index
    %c0_55 = arith.constant 0 : index
    %c0_56 = arith.constant 0 : index
    %149 = vector.load %arg4[%c1_54, %c0_55, %c0_56] : memref<2x32x64xbf16, #tpu.memory_space<vmem>>, vector<1x32x64xbf16>
    %150 = vector.shape_cast %149 : vector<1x32x64xbf16> to vector<32x64xbf16>
    %cst_57 = arith.constant dense<0.000000e+00> : vector<8x64xf32>
    %151 = tpu.matmul %148, %150, %cst_57 {dimension_numbers = #tpu.dot_dimension_numbers<[1], [0], [0], [1], [0, 0, 1, 1], [], []>} : vector<8x32xbf16>, vector<32x64xbf16>, vector<8x64xf32> -> vector<8x64xf32>
    %c1_58 = arith.constant 1 : index
    %c0_59 = arith.constant 0 : index
    %c0_60 = arith.constant 0 : index
    %152 = vector.load %arg5[%c1_58, %c0_59, %c0_60] : memref<2x1x64xf32, #tpu.memory_space<vmem>>, vector<1x1x64xf32>
    %153 = vector.shape_cast %152 : vector<1x1x64xf32> to vector<1x64xf32>
    %154 = vector.broadcast %153 : vector<1x64xf32> to vector<8x64xf32>
    %155 = arith.addf %151, %154 : vector<8x64xf32>
    %c1_61 = arith.constant 1 : index
    %c0_62 = arith.constant 0 : index
    %c0_63 = arith.constant 0 : index
    %156 = vector.load %arg6[%c1_61, %c0_62, %c0_63] : memref<2x32x128xbf16, #tpu.memory_space<vmem>>, vector<1x32x128xbf16>
    %157 = vector.shape_cast %156 : vector<1x32x128xbf16> to vector<32x128xbf16>
    %cst_64 = arith.constant dense<0.000000e+00> : vector<8x128xf32>
    %158 = tpu.matmul %148, %157, %cst_64 {dimension_numbers = #tpu.dot_dimension_numbers<[1], [0], [0], [1], [0, 0, 1, 1], [], []>} : vector<8x32xbf16>, vector<32x128xbf16>, vector<8x128xf32> -> vector<8x128xf32>
    %159 = vector.extract_strided_slice %155 {offsets = [0, 0], sizes = [8, 8], strides = [1, 1]} : vector<8x64xf32> to vector<8x8xf32>
    %160 = vector.extract_strided_slice %155 {offsets = [0, 8], sizes = [8, 8], strides = [1, 1]} : vector<8x64xf32> to vector<8x8xf32>
    %161 = vector.extract_strided_slice %155 {offsets = [0, 16], sizes = [8, 8], strides = [1, 1]} : vector<8x64xf32> to vector<8x8xf32>
    %162 = vector.extract_strided_slice %155 {offsets = [0, 24], sizes = [8, 8], strides = [1, 1]} : vector<8x64xf32> to vector<8x8xf32>
    %163 = vector.shape_cast %159 : vector<8x8xf32> to vector<1x8x8xf32>
    %164 = vector.shape_cast %160 : vector<8x8xf32> to vector<1x8x8xf32>
    %165 = vector.shape_cast %161 : vector<8x8xf32> to vector<1x8x8xf32>
    %166 = vector.shape_cast %162 : vector<8x8xf32> to vector<1x8x8xf32>
    %167 = tpu.concatenate %163, %164, %165, %166 in 0 : vector<1x8x8xf32>, vector<1x8x8xf32>, vector<1x8x8xf32>, vector<1x8x8xf32> -> vector<4x8x8xf32>
    %168 = arith.truncf %167 : vector<4x8x8xf32> to vector<4x8x8xbf16>
    %169 = vector.extract_strided_slice %155 {offsets = [0, 32], sizes = [8, 8], strides = [1, 1]} : vector<8x64xf32> to vector<8x8xf32>
    %170 = vector.extract_strided_slice %155 {offsets = [0, 40], sizes = [8, 8], strides = [1, 1]} : vector<8x64xf32> to vector<8x8xf32>
    %171 = vector.extract_strided_slice %155 {offsets = [0, 48], sizes = [8, 8], strides = [1, 1]} : vector<8x64xf32> to vector<8x8xf32>
    %172 = vector.extract_strided_slice %155 {offsets = [0, 56], sizes = [8, 8], strides = [1, 1]} : vector<8x64xf32> to vector<8x8xf32>
    %173 = vector.shape_cast %169 : vector<8x8xf32> to vector<1x8x8xf32>
    %174 = vector.shape_cast %170 : vector<8x8xf32> to vector<1x8x8xf32>
    %175 = vector.shape_cast %171 : vector<8x8xf32> to vector<1x8x8xf32>
    %176 = vector.shape_cast %172 : vector<8x8xf32> to vector<1x8x8xf32>
    %177 = tpu.concatenate %173, %174, %175, %176 in 0 : vector<1x8x8xf32>, vector<1x8x8xf32>, vector<1x8x8xf32>, vector<1x8x8xf32> -> vector<4x8x8xf32>
    %178 = arith.truncf %177 : vector<4x8x8xf32> to vector<4x8x8xbf16>
    %179 = vector.extract_strided_slice %158 {offsets = [0, 0], sizes = [8, 32], strides = [1, 1]} : vector<8x128xf32> to vector<8x32xf32>
    %180 = vector.extract_strided_slice %158 {offsets = [0, 32], sizes = [8, 32], strides = [1, 1]} : vector<8x128xf32> to vector<8x32xf32>
    %181 = vector.extract_strided_slice %158 {offsets = [0, 64], sizes = [8, 32], strides = [1, 1]} : vector<8x128xf32> to vector<8x32xf32>
    %182 = vector.extract_strided_slice %158 {offsets = [0, 96], sizes = [8, 32], strides = [1, 1]} : vector<8x128xf32> to vector<8x32xf32>
    %183 = vector.shape_cast %179 : vector<8x32xf32> to vector<1x8x32xf32>
    %184 = vector.shape_cast %180 : vector<8x32xf32> to vector<1x8x32xf32>
    %185 = vector.shape_cast %181 : vector<8x32xf32> to vector<1x8x32xf32>
    %186 = vector.shape_cast %182 : vector<8x32xf32> to vector<1x8x32xf32>
    %187 = tpu.concatenate %183, %184, %185, %186 in 0 : vector<1x8x32xf32>, vector<1x8x32xf32>, vector<1x8x32xf32>, vector<1x8x32xf32> -> vector<4x8x32xf32>
    %188 = arith.truncf %187 : vector<4x8x32xf32> to vector<4x8x32xbf16>
    "tpu.trace_start"() <{level = 10 : i32, message = "hqd,hkd->hqk"}> : () -> ()
    %cst_65 = arith.constant dense<0.000000e+00> : vector<4x8x8xf32>
    %189 = tpu.matmul %168, %178, %cst_65 {dimension_numbers = #tpu.dot_dimension_numbers<[2], [2], [1], [1], [0, 0, 0, 1, 1, 1], [0], [0]>} : vector<4x8x8xbf16>, vector<4x8x8xbf16>, vector<4x8x8xf32> -> vector<4x8x8xf32>
    "tpu.trace_stop"() : () -> ()
    %cst_66 = arith.constant dense<0xFF800000> : vector<4x8xf32>
    %190 = vector.multi_reduction <maximumf>, %189, %cst_66 [2] : vector<4x8x8xf32> to vector<4x8xf32>
    %191 = vector.shape_cast %190 : vector<4x8xf32> to vector<4x8x1xf32>
    %192 = vector.broadcast %191 : vector<4x8x1xf32> to vector<4x8x8xf32>
    %193 = arith.subf %189, %192 : vector<4x8x8xf32>
    %194 = math.exp %193 : vector<4x8x8xf32>
    %cst_67 = arith.constant dense<0.000000e+00> : vector<4x8xf32>
    %195 = vector.multi_reduction <add>, %194, %cst_67 [2] : vector<4x8x8xf32> to vector<4x8xf32>
    %196 = vector.shape_cast %195 : vector<4x8xf32> to vector<4x8x1xf32>
    %197 = tpu.reciprocal %196 {approx = true} : vector<4x8x1xf32> -> vector<4x8x1xf32>
    %198 = vector.broadcast %197 : vector<4x8x1xf32> to vector<4x8x8xf32>
    %199 = arith.mulf %194, %198 : vector<4x8x8xf32>
    %200 = arith.truncf %199 : vector<4x8x8xf32> to vector<4x8x8xbf16>
    "tpu.trace_start"() <{level = 10 : i32, message = "hqk,hkd->hqd"}> : () -> ()
    %cst_68 = arith.constant dense<0.000000e+00> : vector<4x8x32xf32>
    %201 = tpu.matmul %200, %188, %cst_68 {dimension_numbers = #tpu.dot_dimension_numbers<[2], [1], [1], [2], [0, 0, 0, 1, 1, 2], [0], [0]>} : vector<4x8x8xbf16>, vector<4x8x32xbf16>, vector<4x8x32xf32> -> vector<4x8x32xf32>
    "tpu.trace_stop"() : () -> ()
    %202 = vector.extract_strided_slice %201 {offsets = [0, 0, 0], sizes = [1, 8, 32], strides = [1, 1, 1]} : vector<4x8x32xf32> to vector<1x8x32xf32>
    %203 = vector.shape_cast %202 : vector<1x8x32xf32> to vector<8x32xf32>
    %204 = vector.extract_strided_slice %201 {offsets = [1, 0, 0], sizes = [1, 8, 32], strides = [1, 1, 1]} : vector<4x8x32xf32> to vector<1x8x32xf32>
    %205 = vector.shape_cast %204 : vector<1x8x32xf32> to vector<8x32xf32>
    %206 = arith.addf %203, %205 : vector<8x32xf32>
    %207 = vector.extract_strided_slice %201 {offsets = [2, 0, 0], sizes = [1, 8, 32], strides = [1, 1, 1]} : vector<4x8x32xf32> to vector<1x8x32xf32>
    %208 = vector.shape_cast %207 : vector<1x8x32xf32> to vector<8x32xf32>
    %209 = arith.addf %206, %208 : vector<8x32xf32>
    %210 = vector.extract_strided_slice %201 {offsets = [3, 0, 0], sizes = [1, 8, 32], strides = [1, 1, 1]} : vector<4x8x32xf32> to vector<1x8x32xf32>
    %211 = vector.shape_cast %210 : vector<1x8x32xf32> to vector<8x32xf32>
    %212 = arith.addf %209, %211 : vector<8x32xf32>
    %c1_69 = arith.constant 1 : index
    %c0_70 = arith.constant 0 : index
    %c0_71 = arith.constant 0 : index
    %213 = vector.load %arg9[%c1_69, %c0_70, %c0_71] : memref<2x8x32xf32, #tpu.memory_space<vmem>>, vector<1x1x32xf32>
    %214 = vector.shape_cast %213 : vector<1x1x32xf32> to vector<1x32xf32>
    %215 = vector.broadcast %214 : vector<1x32xf32> to vector<8x32xf32>
    %216 = arith.addf %212, %215 : vector<8x32xf32>
    %217 = arith.addf %147, %216 : vector<8x32xf32>
    %c1_72 = arith.constant 1 : index
    %c3_73 = arith.constant 3 : index
    %c0_74 = arith.constant 0 : index
    %218 = vector.load %arg9[%c1_72, %c3_73, %c0_74] : memref<2x8x32xf32, #tpu.memory_space<vmem>>, vector<1x1x32xf32>
    %219 = vector.shape_cast %218 : vector<1x1x32xf32> to vector<1x32xf32>
    %c1_75 = arith.constant 1 : index
    %c4_76 = arith.constant 4 : index
    %c0_77 = arith.constant 0 : index
    %220 = vector.load %arg9[%c1_75, %c4_76, %c0_77] : memref<2x8x32xf32, #tpu.memory_space<vmem>>, vector<1x1x32xf32>
    %221 = vector.shape_cast %220 : vector<1x1x32xf32> to vector<1x32xf32>
    %cst_78 = arith.constant dense<0.000000e+00> : vector<8xf32>
    %222 = vector.multi_reduction <add>, %217, %cst_78 [1] : vector<8x32xf32> to vector<8xf32>
    %223 = vector.shape_cast %222 : vector<8xf32> to vector<8x1xf32>
    %cst_79 = arith.constant 3.200000e+01 : f32
    %224 = vector.broadcast %cst_79 : f32 to vector<8x1xf32>
    %225 = arith.divf %223, %224 : vector<8x1xf32>
    %226 = vector.broadcast %225 : vector<8x1xf32> to vector<8x32xf32>
    %227 = arith.subf %217, %226 : vector<8x32xf32>
    %228 = arith.mulf %227, %227 : vector<8x32xf32>
    %cst_80 = arith.constant dense<0.000000e+00> : vector<8xf32>
    %229 = vector.multi_reduction <add>, %228, %cst_80 [1] : vector<8x32xf32> to vector<8xf32>
    %230 = vector.shape_cast %229 : vector<8xf32> to vector<8x1xf32>
    %cst_81 = arith.constant 3.200000e+01 : f32
    %231 = vector.broadcast %cst_81 : f32 to vector<8x1xf32>
    %232 = arith.divf %230, %231 : vector<8x1xf32>
    %cst_82 = arith.constant 9.99999974E-6 : f32
    %233 = vector.broadcast %cst_82 : f32 to vector<8x1xf32>
    %234 = arith.addf %232, %233 : vector<8x1xf32>
    %235 = math.rsqrt %234 : vector<8x1xf32>
    %236 = vector.broadcast %235 : vector<8x1xf32> to vector<8x32xf32>
    %237 = arith.mulf %227, %236 : vector<8x32xf32>
    %238 = vector.broadcast %219 : vector<1x32xf32> to vector<8x32xf32>
    %239 = arith.mulf %237, %238 : vector<8x32xf32>
    %240 = vector.broadcast %221 : vector<1x32xf32> to vector<8x32xf32>
    %241 = arith.addf %239, %240 : vector<8x32xf32>
    %242 = arith.truncf %241 : vector<8x32xf32> to vector<8x32xbf16>
    %c1_83 = arith.constant 1 : index
    %c0_84 = arith.constant 0 : index
    %c0_85 = arith.constant 0 : index
    %243 = vector.load %arg7[%c1_83, %c0_84, %c0_85] : memref<2x32x32xbf16, #tpu.memory_space<vmem>>, vector<1x32x32xbf16>
    %244 = vector.shape_cast %243 : vector<1x32x32xbf16> to vector<32x32xbf16>
    %cst_86 = arith.constant dense<0.000000e+00> : vector<8x32xf32>
    %245 = tpu.matmul %242, %244, %cst_86 {dimension_numbers = #tpu.dot_dimension_numbers<[1], [0], [0], [1], [0, 0, 1, 1], [], []>} : vector<8x32xbf16>, vector<32x32xbf16>, vector<8x32xf32> -> vector<8x32xf32>
    %c1_87 = arith.constant 1 : index
    %c1_88 = arith.constant 1 : index
    %c0_89 = arith.constant 0 : index
    %246 = vector.load %arg9[%c1_87, %c1_88, %c0_89] : memref<2x8x32xf32, #tpu.memory_space<vmem>>, vector<1x1x32xf32>
    %247 = vector.shape_cast %246 : vector<1x1x32xf32> to vector<1x32xf32>
    %248 = vector.broadcast %247 : vector<1x32xf32> to vector<8x32xf32>
    %249 = arith.addf %245, %248 : vector<8x32xf32>
    %cst_90 = arith.constant 0.000000e+00 : f32
    %250 = vector.broadcast %cst_90 : f32 to vector<8x32xf32>
    %251 = arith.maximumf %249, %250 : vector<8x32xf32>
    %252 = arith.truncf %251 : vector<8x32xf32> to vector<8x32xbf16>
    %c1_91 = arith.constant 1 : index
    %c0_92 = arith.constant 0 : index
    %c0_93 = arith.constant 0 : index
    %253 = vector.load %arg8[%c1_91, %c0_92, %c0_93] : memref<2x32x32xbf16, #tpu.memory_space<vmem>>, vector<1x32x32xbf16>
    %254 = vector.shape_cast %253 : vector<1x32x32xbf16> to vector<32x32xbf16>
    %cst_94 = arith.constant dense<0.000000e+00> : vector<8x32xf32>
    %255 = tpu.matmul %252, %254, %cst_94 {dimension_numbers = #tpu.dot_dimension_numbers<[1], [0], [0], [1], [0, 0, 1, 1], [], []>} : vector<8x32xbf16>, vector<32x32xbf16>, vector<8x32xf32> -> vector<8x32xf32>
    %c1_95 = arith.constant 1 : index
    %c2_96 = arith.constant 2 : index
    %c0_97 = arith.constant 0 : index
    %256 = vector.load %arg9[%c1_95, %c2_96, %c0_97] : memref<2x8x32xf32, #tpu.memory_space<vmem>>, vector<1x1x32xf32>
    %257 = vector.shape_cast %256 : vector<1x1x32xf32> to vector<1x32xf32>
    %258 = vector.broadcast %257 : vector<1x32xf32> to vector<8x32xf32>
    %259 = arith.addf %255, %258 : vector<8x32xf32>
    %260 = arith.addf %241, %259 : vector<8x32xf32>
    %c1_98 = arith.constant 1 : index
    %c5_99 = arith.constant 5 : index
    %c0_100 = arith.constant 0 : index
    %261 = vector.load %arg9[%c1_98, %c5_99, %c0_100] : memref<2x8x32xf32, #tpu.memory_space<vmem>>, vector<1x1x32xf32>
    %262 = vector.shape_cast %261 : vector<1x1x32xf32> to vector<1x32xf32>
    %c1_101 = arith.constant 1 : index
    %c6_102 = arith.constant 6 : index
    %c0_103 = arith.constant 0 : index
    %263 = vector.load %arg9[%c1_101, %c6_102, %c0_103] : memref<2x8x32xf32, #tpu.memory_space<vmem>>, vector<1x1x32xf32>
    %264 = vector.shape_cast %263 : vector<1x1x32xf32> to vector<1x32xf32>
    %cst_104 = arith.constant dense<0.000000e+00> : vector<8xf32>
    %265 = vector.multi_reduction <add>, %260, %cst_104 [1] : vector<8x32xf32> to vector<8xf32>
    %266 = vector.shape_cast %265 : vector<8xf32> to vector<8x1xf32>
    %cst_105 = arith.constant 3.200000e+01 : f32
    %267 = vector.broadcast %cst_105 : f32 to vector<8x1xf32>
    %268 = arith.divf %266, %267 : vector<8x1xf32>
    %269 = vector.broadcast %268 : vector<8x1xf32> to vector<8x32xf32>
    %270 = arith.subf %260, %269 : vector<8x32xf32>
    %271 = arith.mulf %270, %270 : vector<8x32xf32>
    %cst_106 = arith.constant dense<0.000000e+00> : vector<8xf32>
    %272 = vector.multi_reduction <add>, %271, %cst_106 [1] : vector<8x32xf32> to vector<8xf32>
    %273 = vector.shape_cast %272 : vector<8xf32> to vector<8x1xf32>
    %cst_107 = arith.constant 3.200000e+01 : f32
    %274 = vector.broadcast %cst_107 : f32 to vector<8x1xf32>
    %275 = arith.divf %273, %274 : vector<8x1xf32>
    %cst_108 = arith.constant 9.99999974E-6 : f32
    %276 = vector.broadcast %cst_108 : f32 to vector<8x1xf32>
    %277 = arith.addf %275, %276 : vector<8x1xf32>
    %278 = math.rsqrt %277 : vector<8x1xf32>
    %279 = vector.broadcast %278 : vector<8x1xf32> to vector<8x32xf32>
    %280 = arith.mulf %270, %279 : vector<8x32xf32>
    %281 = vector.broadcast %262 : vector<1x32xf32> to vector<8x32xf32>
    %282 = arith.mulf %280, %281 : vector<8x32xf32>
    %283 = vector.broadcast %264 : vector<1x32xf32> to vector<8x32xf32>
    %284 = arith.addf %282, %283 : vector<8x32xf32>
    %c0_109 = arith.constant 0 : index
    %c0_110 = arith.constant 0 : index
    %285 = vector.load %arg10[%c0_109, %c0_110] : memref<8x32xf32, #tpu.memory_space<vmem>>, vector<8x32xf32>
    tpu.vector_store %arg10[%c0_109, %c0_110], %284 {strides = array<i32>} : memref<8x32xf32, #tpu.memory_space<vmem>>, vector<8x32xf32>,
    return
  }
  func.func @transform_0(%arg0: i32) -> (i32, i32) {
    %c0_i32 = arith.constant 0 : i32
    %c0_i32_0 = arith.constant 0 : i32
    return %arg0, %c0_i32 : i32, i32
  }
  func.func @transform_1(%arg0: i32) -> (i32, i32) {
    %c0_i32 = arith.constant 0 : i32
    %c0_i32_0 = arith.constant 0 : i32
    %c0_i32_1 = arith.constant 0 : i32
    return %c0_i32, %c0_i32_0 : i32, i32
  }
  func.func @transform_2(%arg0: i32) -> (i32, i32) {
    %c0_i32 = arith.constant 0 : i32
    %c0_i32_0 = arith.constant 0 : i32
    %c0_i32_1 = arith.constant 0 : i32
    return %c0_i32, %c0_i32_0 : i32, i32
  }
  func.func @transform_3(%arg0: i32) -> (i32, i32, i32) {
    %c0_i32 = arith.constant 0 : i32
    %c0_i32_0 = arith.constant 0 : i32
    %c0_i32_1 = arith.constant 0 : i32
    %c0_i32_2 = arith.constant 0 : i32
    return %c0_i32, %c0_i32_0, %c0_i32_1 : i32, i32, i32
  }
  func.func @transform_4(%arg0: i32) -> (i32, i32, i32) {
    %c0_i32 = arith.constant 0 : i32
    %c0_i32_0 = arith.constant 0 : i32
    %c0_i32_1 = arith.constant 0 : i32
    %c0_i32_2 = arith.constant 0 : i32
    return %c0_i32, %c0_i32_0, %c0_i32_1 : i32, i32, i32
  }
  func.func @transform_5(%arg0: i32) -> (i32, i32, i32) {
    %c0_i32 = arith.constant 0 : i32
    %c0_i32_0 = arith.constant 0 : i32
    %c0_i32_1 = arith.constant 0 : i32
    %c0_i32_2 = arith.constant 0 : i32
    return %c0_i32, %c0_i32_0, %c0_i32_1 : i32, i32, i32
  }
  func.func @transform_6(%arg0: i32) -> (i32, i32, i32) {
    %c0_i32 = arith.constant 0 : i32
    %c0_i32_0 = arith.constant 0 : i32
    %c0_i32_1 = arith.constant 0 : i32
    %c0_i32_2 = arith.constant 0 : i32
    return %c0_i32, %c0_i32_0, %c0_i32_1 : i32, i32, i32
  }
  func.func @transform_7(%arg0: i32) -> (i32, i32, i32) {
    %c0_i32 = arith.constant 0 : i32
    %c0_i32_0 = arith.constant 0 : i32
    %c0_i32_1 = arith.constant 0 : i32
    %c0_i32_2 = arith.constant 0 : i32
    return %c0_i32, %c0_i32_0, %c0_i32_1 : i32, i32, i32
  }
  func.func @transform_8(%arg0: i32) -> (i32, i32, i32) {
    %c0_i32 = arith.constant 0 : i32
    %c0_i32_0 = arith.constant 0 : i32
    %c0_i32_1 = arith.constant 0 : i32
    %c0_i32_2 = arith.constant 0 : i32
    return %c0_i32, %c0_i32_0, %c0_i32_1 : i32, i32, i32
  }
  func.func @transform_9(%arg0: i32) -> (i32, i32) {
    %c0_i32 = arith.constant 0 : i32
    %c0_i32_0 = arith.constant 0 : i32
    return %arg0, %c0_i32 : i32, i32
  }
}

</mosaic_0001>

<bundles_post_ra>
// kernel: text_encoder_forward.1
= control target key start
LH: loop header
LB: loop body
LE: loop exit
PB: predicated region body
PF: predicated region fallthrough
CT: control target
= control target key end

     0   :  { %14 = vsyncpa [#allocation3], 0  ;;  %s3248_s0 = inlined_call_operand.vmem [shape: s32[16,1], index: 0, kind: input, shape index: {}]   ;;  %s3249_s1 = inlined_call_operand.vmem [shape: bf16[64,32], index: 1, kind: input, shape index: {}]   ;;  %s3250_s2 = inlined_call_operand.hbm [shape: f32[8,32], index: 2, kind: input, shape index: {}]   ;;  %s3251_s3 = inlined_call_operand.vmem [shape: bf16[2,32,64], index: 3, kind: input, shape index: {}]   ;;  %s3252_s4 = inlined_call_operand.vmem [shape: f32[2,1,64], index: 4, kind: input, shape index: {}]   ;;  %s3253_s5 = inlined_call_operand.vmem [shape: bf16[2,32,128], index: 5, kind: input, shape index: {}]   ;;  %s3254_s6 = inlined_call_operand.hbm [shape: bf16[2,32,32], index: 6, kind: input, shape index: {}]   ;;  %s3255_s7 = inlined_call_operand.hbm [shape: bf16[2,32,32], index: 7, kind: input, shape index: {}]   ;;  %s3256_s8 = inlined_call_operand.hbm [shape: f32[2,8,32], index: 8, kind: input, shape index: {}]   ;;  %s3257_s9 = inlined_call_operand.hbm [shape: f32[16,32], index: 9, kind: output, shape index: {}]  }
   0x1   :  { %15 = vsyncpa [#allocation6], 0 }
   0x2   :  { %16 = vsyncpa [#allocation9], 0 }
   0x3   :  { %17 = vsyncpa [#allocation4], 0 }
   0x4   :  { %19 = vsyncpa [#allocation4 + $0x1], 0  ;;  %s2862_s30 = smov 0   ;;  %s2864_s10 = smov 0  }
   0x5   :  { %s2866_s11 = smov 0   ;;  %s2868_s12 = smov 0  }
   0x6 LB: > { %s2883_s13 = sadd.s32 4294967295, %s2792_s12   ;;  %s2140_s14 = sadd.s32 4294967294, %s2792_s12   ;;  %s2792_s12 = sphi %s2868_s12, %s3279_s12   ;;  %s2788_s11 = sphi %s2866_s11, %s3278_s11   ;;  %s2784_s10 = sphi %s2864_s10, %s3277_s10   ;;  %s2780_s30 = sphi %s2862_s30, %s3276_s30  }
   0x7   : > { %s2887_s15 = sadd.s32 1, %s2792_s12   ;;  %s226_s16 = sadd.s32 1, %s2788_s11 }
   0x8   : > { %s223_s17 = ssub.s32 %s2792_s12, %s2887_s15  ;;  %p236_p0 = scmp.ne.s32.totalorder %s2788_s11, %s2784_s10 }
   0x9   : > { %p224_p1 = scmp.eq.s32.totalorder %s223_s17, 0  ;;  %p237_p2 = scmp.eq.s32.totalorder %s2883_s13, 1 }
   0xa   : > { %p242_p3 = scmp.ne.s32.totalorder %s2784_s10, %s2780_s30  ;;  %p243_p4 = scmp.eq.s32.totalorder %s2140_s14, 1 }
   0xb   : > { %s2898_s18 = scalar_select %p224_p1, %s2788_s11, %s226_s16  }
   0xc   : > { %p2900_p5 = por %p237_p2, %p236_p0  ;;  %p2904_p6 = por %p243_p4, %p242_p3 }
   0xd   : > { %p2141_p7 = scmp.ge.s32.totalorder %s2792_s12, 1  ;;  %p250_p8 = scmp.lt.s32.totalorder %s2792_s12, 3 }
   0xe   : > { %s3262_s19 = scalar_select %p2900_p5, 1, 0 }
   0xf   : > { %s3263_s20 = scalar_select %p2904_p6, 1, 0 }
  0x10   : > { %p3258_p9 = scmp.eq.s32.totalorder %s2883_s13, 0  ;;  %p2911_p10 = pnand %p2141_p7, %p250_p8 }
  0x11   : > { %s2794_s22 = smov [#allocation5]   ;;  %s2795_s25 = smov [#allocation2]  }
  0x12   : > { %s285_s23 = sshll.u32 %s2794_s22, 4  ;;  %p2480_p11 = pneg %p2911_p10  ;;  %s286_s23 = int_to_ptr.vmem [resolvable:$true] %s285_s23 }
  0x13   : > { %s266_s26 = sshll.u32 %s2795_s25, 4  ;;  %s2796_s27 = smov [#allocation7]   ;;  %s267_s26 = int_to_ptr.vmem [resolvable:$true] %s266_s26 }
  0x14   : > { %p2919_p12 = pnand %p3258_p9, %p2480_p11  ;;  %s298_s28 = sshll.u32 %s2796_s27, 4  ;;  %s299_s28 = int_to_ptr.vmem [resolvable:$true] %s298_s28 }
  0x15   : > { %s2627_s29 = scalar_lea.vmem %s286_s23, 512  ;;  %p2635_p3 = scmp.lt.s32.totalorder %s286_s23, %s286_s23 }
  0x16   : > { %p2618_p13 = pneg %p2919_p12  ;;  %p2628_p0 = scmp.ne.s32.totalorder %s286_s23, %s2627_s29 }
  0x17   : > { %p2636_p4 = scmp.lt.s32.totalorder %s2627_s29, %s2627_s29 }
  0x18   : > { %p2630_p1 = pnand %p2628_p0, %p2618_p13 }
  0x19   : > { %p2637_p7 = por %p2636_p4, %p2635_p3 }
  0x1a   : > { %p2631_p2 = pneg %p2630_p1 }
  0x1c   : > { %p2638_p8 = pnand %p2637_p7, %p2631_p2 }
  0x1e   : > { %2641 = shalt.err (!%p2638_p8)
}
  0x1f   : > { %s2797_s14 = smov 64   ;;  %s2798_s16 = smov 4  }
  0x20   : > { %2486 = dma.hbm_to_vmem [thread:$0]  (!%p2919_p12), %s3254_s6, 512, %s286_s23, [#allocation6], %s2797_s14, %s2797_s14, %s2798_s16  }
  0x21   : > { %s2653_s25 = scalar_lea.vmem %s267_s26, 128  ;;  %p2661_p9 = scmp.lt.s32.totalorder %s267_s26, %s267_s26 }
  0x22   : > { %p2654_p11 = scmp.ne.s32.totalorder %s267_s26, %s2653_s25  ;;  %p2662_p6 = scmp.lt.s32.totalorder %s2653_s25, %s2653_s25 }
  0x24   : > { %p2656_p0 = pnand %p2654_p11, %p2618_p13  ;;  %p2663_p3 = por %p2662_p6, %p2661_p9 }
  0x26   : > { %p2657_p1 = pneg %p2656_p0 }
  0x28   : > { %p2664_p2 = pnand %p2663_p3, %p2657_p1 }
  0x2a   : > { %2667 = shalt.err (!%p2664_p2)
}
  0x2b   : > { %2483 = dma.hbm_to_vmem [thread:$0]  (!%p2919_p12), %s3250_s2, 128, %s267_s26, [#allocation3]  }
  0x2c   : > { %s2679_s23 = scalar_lea.vmem %s299_s28, 512  ;;  %p2687_p11 = scmp.lt.s32.totalorder %s299_s28, %s299_s28 }
  0x2d   : > { %p2680_p4 = scmp.ne.s32.totalorder %s299_s28, %s2679_s23  ;;  %p2688_p0 = scmp.lt.s32.totalorder %s2679_s23, %s2679_s23 }
  0x2f   : > { %p2682_p7 = pnand %p2680_p4, %p2618_p13  ;;  %p2689_p5 = por %p2688_p0, %p2687_p11 }
  0x31   : > { %p2683_p8 = pneg %p2682_p7 }
  0x33   : > { %p2690_p6 = pnand %p2689_p5, %p2683_p8 }
  0x35   : > { %2693 = shalt.err (!%p2690_p6)
}
  0x36   : > { %2489 = dma.hbm_to_vmem [thread:$0]  (!%p2919_p12), %s3255_s7, 512, %s299_s28, [#allocation6], %s2797_s14, %s2797_s14, %s2798_s16  }
  0x37   : > { %s2799_s26 = smov [#allocation8]  }
  0x38   : > { %s311_s25 = sshll.u32 %s2799_s26, 4  ;;  %s312_s25 = int_to_ptr.vmem [resolvable:$true] %s311_s25 }
  0x39   : > { %s2705_s27 = scalar_lea.vmem %s312_s25, 256  ;;  %p2713_p2 = scmp.lt.s32.totalorder %s312_s25, %s312_s25 }
  0x3a   : > { %p2706_p9 = scmp.ne.s32.totalorder %s312_s25, %s2705_s27  ;;  %p2714_p4 = scmp.lt.s32.totalorder %s2705_s27, %s2705_s27 }
  0x3c   : > { %p2708_p1 = pnand %p2706_p9, %p2618_p13  ;;  %p2715_p5 = por %p2714_p4, %p2713_p2 }
  0x3e   : > { %p2709_p3 = pneg %p2708_p1 }
  0x40   : > { %p2716_p7 = pnand %p2715_p5, %p2709_p3 }
  0x42   : > { %2719 = shalt.err (!%p2716_p7)
}
  0x43   : > { %s2800_s29 = smov 128   ;;  %s2801_s23 = smov 8  }
  0x44   : > { %2492 = dma.hbm_to_vmem [thread:$0]  (!%p2919_p12), %s3256_s8, 256, %s312_s25, [#allocation9], %s2800_s29, %s2800_s29, %s2801_s23  }
  0x45   : > { %334 = sbr.rel (%p2911_p10) target bundleno = 4755 (0x1293), region = 56  ;;  %p3266_p8 = scmp.eq.s32.totalorder (!%p2911_p10), %s2883_s13, 0 }
  0x4a   : > { %2763 = dma.done.wait (%p3266_p8), [#allocation3], 128   ;;  %p3267_p13 = pmov %p3266_p8 }
  0x4b   : > { %p3268_p11 = pmov %p3266_p8 }
  0x4c   : > { %2765 = vsyncadd (%p3267_p13), [#allocation3], 4294967168 }
  0x4d   : > { %2767 = dma.done.wait (%p3268_p11), [#allocation6], 1024   ;;  %p3269_p0 = pmov %p3266_p8 }
  0x4f   : > { %2769 = vsyncadd (%p3269_p0), [#allocation6], 4294966272  ;;  %p3270_p6 = pmov %p3269_p0 }
  0x50   : > { %p3271_p12 = pmov %p3269_p0 }
  0x51   : > { %2771 = dma.done.wait (%p3270_p6), [#allocation9], 256  }
  0x52   : > { %2773 = vsyncadd (%p3271_p12), [#allocation9], 4294967040  ;;  %p381_p10 = scmp.lt.s32.totalorder %s2883_s13, 1  ;;  %v2802_v0 = vmov 0   ;;  %v2803_v1 = vmov 0.0   ;;  %vm2804_vm0 = vmmov 0   ;;  %v387_v8 = vlaneseq }
  0x53   : > { %2555 = vset.pattern.permute.xlu0 %v2802_v0  ;;  %2290 = vmatprep.subr.bf16.mxu0 %v2803_v1  ;;  %v2556_v3 = vld [vmem:[%s3249_s1 + $0x18] sm:$0xff]   ;;  %v2557_v4 = vld [vmem:[%s3249_s1 + $0x10] sm:$0xff]   ;;  %v2558_v5 = vld [vmem:[%s3249_s1 + $0x8] sm:$0xff]   ;;  %vm429_vm2 = vcmask 523264   ;;  %vm497_vm3 = vcmask 261120   ;;  %s2805_s28 = smov 112  }
  0x54   : > { %s382_s21 = scalar_select %p381_p10, %s2883_s13, 1  ;;  %2302 = vmatprep.subr.bf16.mxu1 %v2803_v1  ;;  %2298 = vmatprep.mubr.msk.bf16.mxu0 %vm2804_vm0, %v2803_v1  ;;  %v2560_v6 = vld [vmem:[%s3251_s3 + $0x8] sm:$0xff]   ;;  %v2559_v7 = vld [vmem:[%s3249_s1] sm:$0xff]   ;;  %v388_v9 = vand.u32 127, %v387_v8  ;;  %vm628_vm4 = vcmask 64512   ;;  %vm873_vm5 = vcmask 1043456  }
  0x55   : > { %2306 = vmatprep.mubr.msk.bf16.mxu1 %vm2804_vm0, %v2803_v1  ;;  %2291 = vmatpush3.bf16.msra.mxu0 %v2556_v3  ;;  %v2561_v13 = vld [vmem:[%s3251_s3] sm:$0xff]   ;;  %v2562_v18 = vld [vmem:[%s3253_s5 + $0x8] sm:$0xff]   ;;  %s2808_s14 = smov 96   ;;  %s3261_s16 = smov 32  }
  0x56   : > { %s2153_s24 = sshll.u32 %s382_s21, 3  ;;  %2292 = vmatprep.subr.bf16.mxu0 %v2803_v1  ;;  %2303 = vmatpush3.bf16.msra.mxu1 %v2560_v6  ;;  %v404_v14 = vld [vmem:[#allocation2] sm:$0xff]  ;;  %s2806_s21 = smov 120  }
  0x57   : > { %s384_s22 = scalar_lea.vmem %s3248_s0, %s2153_s24  ;;  %2304 = vmatprep.subr.bf16.mxu1 %v2803_v1  ;;  %v2563_v22 = vld [vmem:[%s3253_s5] sm:$0xff]   ;;  %s2807_s24 = smov 104  }
  0x58   : > { %v386_v2 = vld [vmem:[%s384_s22] sm:$0xff]  ;;  %s3260_s22 = smov 64   ;;  %s2226_s26 = sshll.u32 %s2883_s13, 7 }
  0x59   : > { %390 = vperm.xlu0 %2555, %v386_v2   ;;  %2293 = vmatpush3.bf16.msra.mxu0 %v2557_v4  ;;  %v2160_v23 = vld [vmem:[%s3252_s4] ss:$0 sm:$0xff]  ;;  %s2038_s17 = scalar_lea.hbm %s3257_s9, %s2226_s26  ;;  %p3274_p1 = scmp.ne.s32.totalorder %s3262_s19, 0 }
  0x5a   : > { %2294 = vmatprep.subr.bf16.mxu0 %v2803_v1  ;;  %2305 = vmatpush3.bf16.msra.mxu1 %v2561_v13 }
  0x5b   : > { %2310 = vmatprep.subr.bf16.mxu1 %v2803_v1 }
  0x5d   : > { %2295 = vmatpush3.bf16.msra.mxu0 %v2558_v5 }
  0x5e   : > { %2296 = vmatprep.subr.bf16.mxu0 %v2803_v1 }
  0x61   : > { %2297 = vmatpush3.bf16.msra.mxu0 %v2559_v7 }
  0x62   : > { %2318 = vmatprep.subr.bf16.mxu0 %v2803_v1 }
  0xd4   : > { %v391_v10 = vpop.permute.xlu0 %390 }
  0xd5   : > { %vm392_vm1 = vcmp.eq.s32.totalorder %v388_v9, %v391_v10 }
  0xd6   : > { %v2154_v11 = vsel %vm392_vm1, 1.0, %v2803_v1 }
  0xd7   : > { %v395_v12 = vpack.c.bf16 %v2154_v11, %v2154_v11 }
  0xd9   : > { %2299 = vmatmul.mubr.msk.bf16.vlgmr.msra.gmra.mxu0 %vm429_vm2, %v395_v12 }
  0xda   : > { %2320 = vmatprep.mubr.msk.bf16.mxu0 %vm2804_vm0, %v2803_v1 }
 0x199   : > { %v467_v15 = vpop.f32.mrf.mxu0 }
 0x19a   : > { %v3009_v16 = vadd.f32 %v467_v15, %v404_v14 }
 0x19b   : > { %v2300_v17 = vpop.f32.mrf.mxu0 }
 0x19c   : > { %v473_v19 = vpack.c.bf16 %v3009_v16, %v3009_v16 }
 0x19d   : > { %v470_v20 = vpop.f32.mrf.mxu0 }
 0x19e   : > { %2307 = vmatmul.mubr.msk.bf16.vlgmr.msra.gmra.mxu1 %vm497_vm3, %v473_v19 }
 0x19f   : > { %v2301_v21 = vpop.f32.mrf.mxu0  ;;  %2311 = vmatpush3.bf16.msra.mxu1 %v2562_v18  ;;  %2314 = vmatprep.mubr.msk.bf16.mxu1 %vm2804_vm0, %v2803_v1 }
 0x1a0   : > { %2312 = vmatprep.subr.bf16.mxu1 %v2803_v1 }
 0x1a3   : > { %2313 = vmatpush3.bf16.msra.mxu1 %v2563_v22 }
 0x1a4   : > { %2324 = vmatprep.subr.bf16.mxu1 %v2803_v1 }
 0x1a6   : > { %2315 = vmatmul.mubr.msk.bf16.vlgmr.msra.gmra.mxu1 %vm497_vm3, %v473_v19 }
 0x1a7   : > { %2326 = vmatprep.mubr.msk.bf16.mxu1 %vm2804_vm0, %v2803_v1 }
 0x25e   : > { %v535_v24 = vpop.f32.mrf.mxu1 }
 0x25f   : > { %v536_v25 = vadd.f32 %v2160_v23, %v535_v24 }
 0x260   : > { %v2308_v26 = vpop.f32.mrf.mxu1 }
 0x261   : > { %601 = vrot.lane.b32.xlu1 %v536_v25, %s2805_s28  ;;  %598 = vrot.lane.b32.xlu0 %v536_v25, %s2806_s21  ;;  %v607_v28 = vpack.c.bf16 %v536_v25, %v536_v25 }
 0x262   : > { %v538_v27 = vpop.f32.mrf.mxu1 }
 0x264   : > { %v2309_v29 = vpop.f32.mrf.mxu1 }
 0x265   : > { %604 = vrot.lane.b32.xlu1 %v536_v25, %s2807_s24  ;;  %626 = vrot.lane.b32.xlu0 %v607_v28, %s2808_s14 }
 0x266   : > { %v3034_v30 = vpop.f32.mrf.mxu1 }
 0x267   : > { %v621_v46 = vpack.c.bf16 %v3034_v30, %v3034_v30 }
 0x268   : > { %v2316_v31 = vpop.f32.mrf.mxu1 }
 0x269   : > { %v875_v49 = vsel %vm873_vm5, %v621_v46, 0 }
 0x26a   : > { %v594_v32 = vpop.f32.mrf.mxu1 }
 0x26c   : > { %v2317_v33 = vpop.f32.mrf.mxu1 }
 0x2d3   : > { %v602_v34 = vpop.permute.xlu1 %601  ;;  %v599_v35 = vpop.permute.xlu0 %598 }
 0x2d4   : > { %v609_v36 = vpack.c.bf16 %v602_v34, %v602_v34  ;;  %v608_v37 = vpack.c.bf16 %v599_v35, %v599_v35 }
 0x2d6   : > { %676 = vrot.lane.b32.xlu1 %v608_v37, %s2808_s14  ;;  %725 = vrot.lane.b32.xlu0 %v609_v36, %s2808_s14 }
 0x2d7   : > { %v605_v38 = vpop.permute.xlu1 %604  ;;  %v627_v39 = vpop.permute.xlu0 %626 }
 0x2d8   : > { %v610_v40 = vpack.c.bf16 %v605_v38, %v605_v38  ;;  %v633_v41 = vsel %vm628_vm4, %v627_v39, 0 }
 0x2d9   : > { %2319 = vmatpush3.bf16.xpose.msra.mxu0 %v633_v41 }
 0x2da   : > { %774 = vrot.lane.b32.xlu1 %v610_v40, %s2808_s14  ;;  %2330 = vmatprep.subr.bf16.mxu0 %v2803_v1 }
 0x2e0   : > { %2321 = vmatmul.mubr.msk.bf16.vlgmr.msra.gmra.mxu0 %vm628_vm4, %v607_v28 }
 0x2e1   : > { %2332 = vmatprep.mubr.msk.bf16.mxu0 %vm2804_vm0, %v2803_v1 }
 0x348   : > { %v677_v42 = vpop.permute.xlu1 %676  ;;  %v726_v43 = vpop.permute.xlu0 %725 }
 0x349   : > { %v682_v44 = vsel %vm628_vm4, %v677_v42, 0  ;;  %v731_v45 = vsel %vm628_vm4, %v726_v43, 0 }
 0x34a   : > { %2325 = vmatpush3.bf16.xpose.msra.mxu1 %v682_v44  ;;  %2331 = vmatpush3.bf16.xpose.msra.mxu0 %v731_v45 }
 0x34b   : > { %2336 = vmatprep.subr.bf16.mxu1 %v2803_v1  ;;  %2342 = vmatprep.subr.bf16.mxu0 %v2803_v1 }
 0x34c   : > { %v775_v47 = vpop.permute.xlu1 %774 }
 0x34d   : > { %v780_v48 = vsel %vm628_vm4, %v775_v47, 0 }
 0x351   : > { %2327 = vmatmul.mubr.msk.bf16.vlgmr.msra.gmra.mxu1 %vm628_vm4, %v608_v37  ;;  %2333 = vmatmul.mubr.msk.bf16.vlgmr.msra.gmra.mxu0 %vm628_vm4, %v609_v36 }
 0x352   : > { %2337 = vmatpush3.bf16.xpose.msra.mxu1 %v780_v48  ;;  %2343 = vmatpush3.bf16.msra.mxu0 %v875_v49 }
 0x353   : > { %2338 = vmatprep.mubr.msk.bf16.mxu1 %vm2804_vm0, %v2803_v1  ;;  %2348 = vmatprep.subr.bf16.mxu1 %v2803_v1 }
 0x354   : > { %2344 = vmatprep.mubr.msk.bf16.mxu0 %vm2804_vm0, %v2803_v1  ;;  %2354 = vmatprep.subr.bf16.mxu0 %v2803_v1 }
 0x359   : > { %2339 = vmatmul.mubr.msk.bf16.vlgmr.msra.gmra.mxu1 %vm628_vm4, %v610_v40 }
 0x35a   : > { %2350 = vmatprep.mubr.msk.bf16.mxu1 %vm2804_vm0, %v2803_v1 }
 0x3a0   : > { %v669_v50 = vpop.f32.mrf.mxu0 }
 0x3a1   : > { %v822_v51 = vsel %vm628_vm4, %v669_v50, -inf }
 0x3a2   : > { %823 = vmax.xlane.f32.xlu0 %v822_v51  ;;  %v2322_v52 = vpop.f32.mrf.mxu0 }
 0x3a4   : > { %v672_v53 = vpop.f32.mrf.mxu0 }
 0x3a6   : > { %v2323_v54 = vpop.f32.mrf.mxu0 }
 0x411   : > { %v718_v55 = vpop.f32.mrf.mxu1  ;;  %v767_v56 = vpop.f32.mrf.mxu0 }
 0x412   : > { %v825_v57 = vsel %vm628_vm4, %v718_v55, -inf  ;;  %v828_v58 = vsel %vm628_vm4, %v767_v56, -inf }
 0x413   : > { %826 = vmax.xlane.f32.xlu1 %v825_v57  ;;  %v2328_v59 = vpop.f32.mrf.mxu1  ;;  %829 = vmax.xlane.f32.xlu0 %v828_v58  ;;  %v2334_v60 = vpop.f32.mrf.mxu0 }
 0x415   : > { %v721_v61 = vpop.f32.mrf.mxu1  ;;  %v770_v62 = vpop.f32.mrf.mxu0 }
 0x417   : > { %v2329_v63 = vpop.f32.mrf.mxu1  ;;  %v2335_v0 = vpop.f32.mrf.mxu0 }
 0x419   : > { %v816_v2 = vpop.f32.mrf.mxu1 }
 0x41a   : > { %v831_v3 = vsel %vm628_vm4, %v816_v2, -inf }
 0x41b   : > { %v2340_v4 = vpop.f32.mrf.mxu1  ;;  %832 = vmax.xlane.f32.xlu0 %v831_v3 }
 0x41d   : > { %v819_v5 = vpop.f32.mrf.mxu1 }
 0x41e   : > { %v2175_v5 = vld [vmem:[#allocation8] ss:$0 sm:$0xff] }
 0x41f   : > { %v2341_v6 = vpop.f32.mrf.mxu1 }
 0x424   : > { %612 = vrot.lane.b32.xlu1 %v3034_v30, %s2808_s14 }
 0x42b   : > { %v824_v7 = vpop.xlane.xlu0 %823 }
 0x42c   : > { %v834_v8 = vsub.f32 %v669_v50, %v824_v7 }
 0x42e   : > { %v838_v9 = vmul.f32 1.442695, %v834_v8 }
 0x430   : > { %2576 = vpow2.f32 %v838_v9 }
 0x43d   : > { %v2577_v10 = vpop.eup %2576 }
 0x43e   : > { %v846_v11 = vsel %vm628_vm4, %v2577_v10, 0.0 }
 0x448   : > { %847 = vadd.xlane.f32.xlu1 %v846_v11 }
 0x49c   : > { %v827_v12 = vpop.xlane.xlu1 %826  ;;  %v830_v13 = vpop.xlane.xlu0 %829 }
 0x49d   : > { %v835_v14 = vsub.f32 %v718_v55, %v827_v12  ;;  %v836_v15 = vsub.f32 %v767_v56, %v830_v13 }
 0x49f   : > { %v840_v17 = vmul.f32 1.442695, %v835_v14  ;;  %v842_v18 = vmul.f32 1.442695, %v836_v15 }
 0x4a0   : > { %v613_v19 = vpop.permute.xlu1 %612 }
 0x4a1   : > { %2578 = vpow2.f32 %v840_v17  ;;  %v622_v20 = vpack.c.bf16 %v613_v19, %v613_v19  ;;  %v2564_v19 = vld [vmem:[#allocation5 + $0x8] sm:$0xff]  }
 0x4a2   : > { %2580 = vpow2.f32 %v842_v18 }
 0x4a3   : > { %v921_v21 = vsel %vm873_vm5, %v622_v20, 0  ;;  %v2565_v20 = vld [vmem:[#allocation5] sm:$0xff]  }
 0x4a4   : > { %2349 = vmatpush3.bf16.msra.mxu1 %v921_v21  ;;  %v833_v22 = vpop.xlane.xlu0 %832 }
 0x4a5   : > { %v837_v23 = vsub.f32 %v816_v2, %v833_v22  ;;  %2360 = vmatprep.subr.bf16.mxu1 %v2803_v1 }
 0x4a7   : > { %v844_v24 = vmul.f32 1.442695, %v837_v23 }
 0x4a9   : > { %2582 = vpow2.f32 %v844_v24  ;;  %v2176_v24 = vld [vmem:[#allocation8 + $0x3] ss:$0 sm:$0xff] }
 0x4ae   : > { %v2579_v25 = vpop.eup %2578 }
 0x4af   : > { %v2581_v26 = vpop.eup %2580  ;;  %v849_v27 = vsel %vm628_vm4, %v2579_v25, 0.0 }
 0x4b0   : > { %850 = vadd.xlane.f32.xlu0 %v849_v27  ;;  %v852_v28 = vsel %vm628_vm4, %v2581_v26, 0.0 }
 0x4b1   : > { %853 = vadd.xlane.f32.xlu1 %v852_v28 }
 0x4b6   : > { %v2583_v29 = vpop.eup %2582 }
 0x4b7   : > { %v855_v31 = vsel %vm628_vm4, %v2583_v29, 0.0 }
 0x4b8   : > { %856 = vadd.xlane.f32.xlu0 %v855_v31  ;;  %v2566_v31 = vld [vmem:[#allocation7 + $0x8] sm:$0xff]  }
 0x4c2   : > { %618 = vrot.lane.b32.xlu1 %v3034_v30, %s3261_s16 }
 0x4ce   : > { %615 = vrot.lane.b32.xlu0 %v3034_v30, %s3260_s22 }
 0x4d1   : > { %v848_v32 = vpop.xlane.xlu1 %847 }
 0x4d2   : > { %2584 = vrcp.f32 %v848_v32  ;;  %v2567_v32 = vld [vmem:[#allocation7] sm:$0xff]  }
 0x4df   : > { %v2585_v33 = vpop.eup %2584 }
 0x4e0   : > { %v862_v34 = vmul.f32 %v2585_v33, %v2577_v10  ;;  %v2178_v33 = vld [vmem:[#allocation8 + $0x1] ss:$0 sm:$0xff] }
 0x4e2   : > { %v866_v35 = vpack.c.bf16 %v862_v34, %v862_v34 }
 0x4e4   : > { %2345 = vmatmul.mubr.msk.bf16.vlgmr.msra.gmra.mxu0 %vm628_vm4, %v866_v35 }
 0x4e5   : > { %2356 = vmatprep.mubr.msk.bf16.mxu0 %vm2804_vm0, %v2803_v1 }
 0x539   : > { %v851_v36 = vpop.xlane.xlu0 %850 }
 0x53a   : > { %v854_v37 = vpop.xlane.xlu1 %853  ;;  %2586 = vrcp.f32 %v851_v36 }
 0x53b   : > { %2588 = vrcp.f32 %v854_v37 }
 0x53e   : > { %v619_v39 = vpop.permute.xlu1 %618 }
 0x53f   : > { %v624_v43 = vpack.c.bf16 %v619_v39, %v619_v39 }
 0x541   : > { %v857_v38 = vpop.xlane.xlu0 %856  ;;  %v1013_v49 = vsel %vm873_vm5, %v624_v43, 0 }
 0x542   : > { %2590 = vrcp.f32 %v857_v38 }
 0x545   : > { %v616_v40 = vpop.permute.xlu0 %615 }
 0x546   : > { %v623_v41 = vpack.c.bf16 %v616_v40, %v616_v40 }
 0x547   : > { %v2587_v30 = vpop.eup %2586 }
 0x548   : > { %v2589_v42 = vpop.eup %2588  ;;  %v967_v44 = vsel %vm873_vm5, %v623_v41, 0  ;;  %v863_v45 = vmul.f32 %v2587_v30, %v2579_v25  ;;  %v2182_v41 = vld [vmem:[#allocation8 + $0x2] ss:$0 sm:$0xff] }
 0x549   : > { %2355 = vmatpush3.bf16.msra.mxu0 %v967_v44  ;;  %v864_v46 = vmul.f32 %v2589_v42, %v2581_v26  ;;  %v2177_v26 = vld [vmem:[#allocation8 + $0x4] ss:$0 sm:$0xff] }
 0x54a   : > { %v867_v47 = vpack.c.bf16 %v863_v45, %v863_v45  ;;  %2366 = vmatprep.subr.bf16.mxu0 %v2803_v1 }
 0x54b   : > { %v868_v48 = vpack.c.bf16 %v864_v46, %v864_v46 }
 0x54c   : > { %2351 = vmatmul.mubr.msk.bf16.vlgmr.msra.gmra.mxu1 %vm628_vm4, %v867_v47 }
 0x54d   : > { %2357 = vmatmul.mubr.msk.bf16.vlgmr.msra.gmra.mxu0 %vm628_vm4, %v868_v48  ;;  %2361 = vmatpush3.bf16.msra.mxu1 %v1013_v49 }
 0x54e   : > { %2362 = vmatprep.mubr.msk.bf16.mxu1 %vm2804_vm0, %v2803_v1  ;;  %2370 = vmatprep.mubr.msk.bf16.mxu0 %vm2804_vm0, %v2803_v1 }
 0x54f   : > { %v2591_v50 = vpop.eup %2590  ;;  %2374 = vmatprep.subr.bf16.mxu1 %v2803_v1  ;;  %2367 = vmatpush3.bf16.msra.mxu0 %v2564_v19 }
 0x550   : > { %v865_v51 = vmul.f32 %v2591_v50, %v2583_v29  ;;  %2368 = vmatprep.subr.bf16.mxu0 %v2803_v1 }
 0x552   : > { %v869_v52 = vpack.c.bf16 %v865_v51, %v865_v51 }
 0x553   : > { %2369 = vmatpush3.bf16.msra.mxu0 %v2565_v20 }
 0x554   : > { %2363 = vmatmul.mubr.msk.bf16.vlgmr.msra.gmra.mxu1 %vm628_vm4, %v869_v52  ;;  %2382 = vmatprep.subr.bf16.mxu0 %v2803_v1 }
 0x555   : > { %2378 = vmatprep.mubr.msk.bf16.mxu1 %vm2804_vm0, %v2803_v1  ;;  %2375 = vmatpush3.bf16.msra.mxu1 %v2566_v31 }
 0x556   : > { %2376 = vmatprep.subr.bf16.mxu1 %v2803_v1 }
 0x559   : > { %2377 = vmatpush3.bf16.msra.mxu1 %v2567_v32 }
 0x55a   : > { %2390 = vmatprep.subr.bf16.mxu1 %v2803_v1 }
 0x5a4   : > { %v911_v53 = vpop.f32.mrf.mxu0 }
 0x5a6   : > { %v2346_v54 = vpop.f32.mrf.mxu0 }
 0x5a7   : > { %v2569_v54 = vld [vmem:[%s3253_s5 + $0x18] sm:$0xff]  }
 0x5a8   : > { %v914_v55 = vpop.f32.mrf.mxu0 }
 0x5a9   : > { %v2570_v55 = vld [vmem:[%s3251_s3 + $0x10] sm:$0xff]  }
 0x5aa   : > { %v2347_v56 = vpop.f32.mrf.mxu0 }
 0x5ab   : > { %v2571_v56 = vld [vmem:[%s3253_s5 + $0x10] sm:$0xff]  }
 0x60c   : > { %v957_v57 = vpop.f32.mrf.mxu1 }
 0x60d   : > { %v1003_v58 = vpop.f32.mrf.mxu0  ;;  %v1055_v60 = vadd.f32 %v957_v57, %v911_v53  ;;  %v2568_v53 = vld [vmem:[%s3251_s3 + $0x18] sm:$0xff]  }
 0x60e   : > { %v2352_v59 = vpop.f32.mrf.mxu1 }
 0x60f   : > { %v2358_v61 = vpop.f32.mrf.mxu0  ;;  %v1056_v2 = vadd.f32 %v1055_v60, %v1003_v58 }
 0x610   : > { %v960_v62 = vpop.f32.mrf.mxu1  ;;  %v2186_v61 = vld [vmem:[#allocation8 + $0x5] ss:$0 sm:$0xff] }
 0x611   : > { %v1006_v63 = vpop.f32.mrf.mxu0 }
 0x612   : > { %v2353_v0 = vpop.f32.mrf.mxu1  ;;  %v2187_v63 = vld [vmem:[#allocation8 + $0x6] ss:$0 sm:$0xff] }
 0x613   : > { %v2359_v3 = vpop.f32.mrf.mxu0 }
 0x614   : > { %v1049_v4 = vpop.f32.mrf.mxu1 }
 0x615   : > { %v1057_v6 = vadd.f32 %v1056_v2, %v1049_v4  ;;  %v2193_v4 = vld [vmem:[%s3252_s4 + $0x1] ss:$0 sm:$0xff] }
 0x616   : > { %v2364_v7 = vpop.f32.mrf.mxu1 }
 0x617   : > { %v1063_v8 = vadd.f32 %v2175_v5, %v1057_v6 }
 0x618   : > { %v1052_v9 = vpop.f32.mrf.mxu1 }
 0x619   : > { %v1064_v10 = vadd.f32 %v1063_v8, %v3009_v16 }
 0x61a   : > { %v2365_v11 = vpop.f32.mrf.mxu1 }
 0x61b   : > { %v1067_v12 = vsel %vm497_vm3, %v1064_v10, 0.0 }
 0x61c   : > { %1068 = vadd.xlane.f32.xlu1 %v1067_v12 }
 0x6a5   : > { %v1069_v13 = vpop.xlane.xlu1 %1068 }
 0x6a6   : > { %v1071_v14 = vmul.f32 0.03125, %v1069_v13 }
 0x6a8   : > { %v1072_v15 = vsub.f32 %v1064_v10, %v1071_v14 }
 0x6aa   : > { %v1073_v17 = vmul.f32 %v1072_v15, %v1072_v15 }
 0x6ac   : > { %v1074_v18 = vsel %vm497_vm3, %v1073_v17, 0.0 }
 0x6ad   : > { %1075 = vadd.xlane.f32.xlu0 %v1074_v18 }
 0x736   : > { %v1076_v16 = vpop.xlane.xlu0 %1075 }
 0x737   : > { %v1077_v21 = vmul.f32 0.03125, %v1076_v16 }
 0x739   : > { %v1078_v22 = vadd.f32 1e-05, %v1077_v21 }
 0x73b   : > { %2592 = vrsqrt.f32 %v1078_v22 }
 0x748   : > { %v2593_v23 = vpop.eup %2592 }
 0x749   : > { %v1080_v25 = vmul.f32 %v2593_v23, %v1072_v15 }
 0x74b   : > { %v1085_v27 = vmul.f32 %v2176_v24, %v1080_v25 }
 0x74d   : > { %v1090_v28 = vadd.f32 %v2177_v26, %v1085_v27 }
 0x74f   : > { %v1091_v29 = vpack.c.bf16 %v1090_v28, %v1090_v28 }
 0x751   : > { %2371 = vmatmul.mubr.msk.bf16.vlgmr.msra.gmra.mxu0 %vm497_vm3, %v1091_v29 }
 0x752   : > { %2386 = vmatprep.mubr.msk.bf16.mxu0 %vm2804_vm0, %v2803_v1  ;;  %2383 = vmatpush3.bf16.msra.mxu0 %v2568_v53 }
 0x753   : > { %2384 = vmatprep.subr.bf16.mxu0 %v2803_v1 }
 0x756   : > { %2385 = vmatpush3.bf16.msra.mxu0 %v2570_v55 }
 0x757   : > { %2398 = vmatprep.subr.bf16.mxu0 %v2803_v1 }
 0x811   : > { %v1150_v34 = vpop.f32.mrf.mxu0 }
 0x812   : > { %v1151_v35 = vadd.f32 %v2178_v33, %v1150_v34 }
 0x813   : > { %v2372_v36 = vpop.f32.mrf.mxu0 }
 0x814   : > { %v1156_v37 = vmax.f32 %v1151_v35, 0.0 }
 0x815   : > { %v1153_v38 = vpop.f32.mrf.mxu0 }
 0x816   : > { %v1157_v39 = vpack.c.bf16 %v1156_v37, %v1156_v37 }
 0x817   : > { %v2373_v40 = vpop.f32.mrf.mxu0 }
 0x818   : > { %2379 = vmatmul.mubr.msk.bf16.vlgmr.msra.gmra.mxu1 %vm497_vm3, %v1157_v39 }
 0x819   : > { %2394 = vmatprep.mubr.msk.bf16.mxu1 %vm2804_vm0, %v2803_v1  ;;  %2391 = vmatpush3.bf16.msra.mxu1 %v2569_v54 }
 0x81a   : > { %2392 = vmatprep.subr.bf16.mxu1 %v2803_v1 }
 0x81d   : > { %2393 = vmatpush3.bf16.msra.mxu1 %v2571_v56 }
 0x81e   : > { %2404 = vmatprep.subr.bf16.mxu1 %v2803_v1 }
 0x8d8   : > { %v1216_v30 = vpop.f32.mrf.mxu1 }
 0x8d9   : > { %v1217_v42 = vadd.f32 %v2182_v41, %v1216_v30 }
 0x8da   : > { %v2380_v43 = vpop.f32.mrf.mxu1 }
 0x8db   : > { %v1222_v44 = vadd.f32 %v1217_v42, %v1090_v28 }
 0x8dc   : > { %v1219_v45 = vpop.f32.mrf.mxu1 }
 0x8dd   : > { %v1225_v46 = vsel %vm497_vm3, %v1222_v44, 0.0 }
 0x8de   : > { %1226 = vadd.xlane.f32.xlu0 %v1225_v46  ;;  %v2381_v47 = vpop.f32.mrf.mxu1 }
 0x967   : > { %v1227_v48 = vpop.xlane.xlu0 %1226 }
 0x968   : > { %v1228_v49 = vmul.f32 0.03125, %v1227_v48 }
 0x96a   : > { %v1229_v50 = vsub.f32 %v1222_v44, %v1228_v49 }
 0x96c   : > { %v1230_v51 = vmul.f32 %v1229_v50, %v1229_v50 }
 0x96e   : > { %v1231_v52 = vsel %vm497_vm3, %v1230_v51, 0.0 }
 0x96f   : > { %1232 = vadd.xlane.f32.xlu1 %v1231_v52 }
 0x9f8   : > { %v1233_v57 = vpop.xlane.xlu1 %1232 }
 0x9f9   : > { %v1234_v58 = vmul.f32 0.03125, %v1233_v57 }
 0x9fb   : > { %v1235_v59 = vadd.f32 1e-05, %v1234_v58 }
 0x9fd   : > { %2594 = vrsqrt.f32 %v1235_v59 }
 0xa0a   : > { %v2595_v60 = vpop.eup %2594 }
 0xa0b   : > { %v1237_v62 = vmul.f32 %v2595_v60, %v1229_v50 }
 0xa0d   : > { %v1242_v0 = vmul.f32 %v2186_v61, %v1237_v62 }
 0xa0f   : > { %v3126_v2 = vadd.f32 %v2187_v63, %v1242_v0 }
 0xa11   : > { %v1248_v3 = vpack.c.bf16 %v3126_v2, %v3126_v2 }
 0xa13   : > { %2387 = vmatmul.mubr.msk.bf16.vlgmr.msra.gmra.mxu0 %vm497_vm3, %v1248_v3  ;;  %2395 = vmatmul.mubr.msk.bf16.vlgmr.msra.gmra.mxu1 %vm497_vm3, %v1248_v3 }
 0xa14   : > { %2400 = vmatprep.mubr.msk.bf16.mxu0 %vm2804_vm0, %v2803_v1  ;;  %2406 = vmatprep.mubr.msk.bf16.mxu1 %vm2804_vm0, %v2803_v1 }
 0xad3   : > { %v1311_v5 = vpop.f32.mrf.mxu0  ;;  %v3139_v6 = vpop.f32.mrf.mxu1 }
 0xad4   : > { %v1312_v7 = vadd.f32 %v2193_v4, %v1311_v5  ;;  %v1398_v27 = vpack.c.bf16 %v3139_v6, %v3139_v6 }
 0xad5   : > { %v2388_v8 = vpop.f32.mrf.mxu0  ;;  %v2396_v9 = vpop.f32.mrf.mxu1 }
 0xad6   : > { %1378 = vrot.lane.b32.xlu1 %v1312_v7, %s2805_s28  ;;  %1375 = vrot.lane.b32.xlu0 %v1312_v7, %s2806_s21  ;;  %v1384_v12 = vpack.c.bf16 %v1312_v7, %v1312_v7  ;;  %v1650_v31 = vsel %vm873_vm5, %v1398_v27, 0  ;;  %s3272_s28 = smov 32   ;;  %s3273_s21 = smov 64  }
 0xad7   : > { %v1314_v10 = vpop.f32.mrf.mxu0  ;;  %v1371_v11 = vpop.f32.mrf.mxu1 }
 0xad9   : > { %v2389_v13 = vpop.f32.mrf.mxu0  ;;  %v2397_v14 = vpop.f32.mrf.mxu1 }
 0xada   : > { %1381 = vrot.lane.b32.xlu1 %v1312_v7, %s2807_s24  ;;  %1403 = vrot.lane.b32.xlu0 %v1384_v12, %s2808_s14  ;;  %s378_s24 = sand.u32 1, %s2784_s10  }
 0xadb   : > { %s2027_s16 = scalar_lea.sflag [#allocation4], %s378_s24 }
 0xb48   : > { %v1379_v15 = vpop.permute.xlu1 %1378  ;;  %v1376_v17 = vpop.permute.xlu0 %1375 }
 0xb49   : > { %v1386_v18 = vpack.c.bf16 %v1379_v15, %v1379_v15  ;;  %v1385_v19 = vpack.c.bf16 %v1376_v17, %v1376_v17 }
 0xb4b   : > { %1452 = vrot.lane.b32.xlu1 %v1385_v19, %s2808_s14  ;;  %1501 = vrot.lane.b32.xlu0 %v1386_v18, %s2808_s14 }
 0xb4c   : > { %v1382_v20 = vpop.permute.xlu1 %1381  ;;  %v1404_v16 = vpop.permute.xlu0 %1403 }
 0xb4d   : > { %v1387_v21 = vpack.c.bf16 %v1382_v20, %v1382_v20  ;;  %v1409_v22 = vsel %vm628_vm4, %v1404_v16, 0 }
 0xb4e   : > { %2399 = vmatpush3.bf16.xpose.msra.mxu0 %v1409_v22 }
 0xb4f   : > { %1550 = vrot.lane.b32.xlu1 %v1387_v21, %s2808_s14  ;;  %2410 = vmatprep.subr.bf16.mxu0 %v2803_v1 }
 0xb55   : > { %2401 = vmatmul.mubr.msk.bf16.vlgmr.msra.gmra.mxu0 %vm628_vm4, %v1384_v12 }
 0xb56   : > { %2412 = vmatprep.mubr.msk.bf16.mxu0 %vm2804_vm0, %v2803_v1 }
 0xbbd   : > { %v1453_v23 = vpop.permute.xlu1 %1452  ;;  %v1502_v24 = vpop.permute.xlu0 %1501 }
 0xbbe   : > { %v1458_v25 = vsel %vm628_vm4, %v1453_v23, 0  ;;  %v1507_v26 = vsel %vm628_vm4, %v1502_v24, 0 }
 0xbbf   : > { %2405 = vmatpush3.bf16.xpose.msra.mxu1 %v1458_v25  ;;  %2411 = vmatpush3.bf16.xpose.msra.mxu0 %v1507_v26 }
 0xbc0   : > { %2416 = vmatprep.subr.bf16.mxu1 %v2803_v1  ;;  %2422 = vmatprep.subr.bf16.mxu0 %v2803_v1 }
 0xbc1   : > { %v1551_v28 = vpop.permute.xlu1 %1550 }
 0xbc2   : > { %v1556_v29 = vsel %vm628_vm4, %v1551_v28, 0 }
 0xbc6   : > { %2407 = vmatmul.mubr.msk.bf16.vlgmr.msra.gmra.mxu1 %vm628_vm4, %v1385_v19  ;;  %2413 = vmatmul.mubr.msk.bf16.vlgmr.msra.gmra.mxu0 %vm628_vm4, %v1386_v18 }
 0xbc7   : > { %2417 = vmatpush3.bf16.xpose.msra.mxu1 %v1556_v29  ;;  %2423 = vmatpush3.bf16.msra.mxu0 %v1650_v31 }
 0xbc8   : > { %2418 = vmatprep.mubr.msk.bf16.mxu1 %vm2804_vm0, %v2803_v1  ;;  %2428 = vmatprep.subr.bf16.mxu1 %v2803_v1 }
 0xbc9   : > { %2424 = vmatprep.mubr.msk.bf16.mxu0 %vm2804_vm0, %v2803_v1  ;;  %2434 = vmatprep.subr.bf16.mxu0 %v2803_v1 }
 0xbce   : > { %2419 = vmatmul.mubr.msk.bf16.vlgmr.msra.gmra.mxu1 %vm628_vm4, %v1387_v21 }
 0xbcf   : > { %2430 = vmatprep.mubr.msk.bf16.mxu1 %vm2804_vm0, %v2803_v1 }
 0xc15   : > { %v1445_v32 = vpop.f32.mrf.mxu0 }
 0xc16   : > { %v1598_v33 = vsel %vm628_vm4, %v1445_v32, -inf }
 0xc17   : > { %1599 = vmax.xlane.f32.xlu0 %v1598_v33  ;;  %v2402_v34 = vpop.f32.mrf.mxu0 }
 0xc19   : > { %v1448_v35 = vpop.f32.mrf.mxu0 }
 0xc1b   : > { %v2403_v36 = vpop.f32.mrf.mxu0 }
 0xc86   : > { %v1494_v37 = vpop.f32.mrf.mxu1  ;;  %v1543_v38 = vpop.f32.mrf.mxu0 }
 0xc87   : > { %v1601_v39 = vsel %vm628_vm4, %v1494_v37, -inf  ;;  %v1604_v40 = vsel %vm628_vm4, %v1543_v38, -inf }
 0xc88   : > { %1602 = vmax.xlane.f32.xlu1 %v1601_v39  ;;  %v2408_v41 = vpop.f32.mrf.mxu1  ;;  %1605 = vmax.xlane.f32.xlu0 %v1604_v40  ;;  %v2414_v30 = vpop.f32.mrf.mxu0 }
 0xc8a   : > { %v1497_v42 = vpop.f32.mrf.mxu1  ;;  %v1546_v43 = vpop.f32.mrf.mxu0 }
 0xc8c   : > { %v2409_v44 = vpop.f32.mrf.mxu1  ;;  %v2415_v45 = vpop.f32.mrf.mxu0 }
 0xc8e   : > { %v1592_v46 = vpop.f32.mrf.mxu1 }
 0xc8f   : > { %v1607_v47 = vsel %vm628_vm4, %v1592_v46, -inf }
 0xc90   : > { %v2420_v48 = vpop.f32.mrf.mxu1  ;;  %1608 = vmax.xlane.f32.xlu0 %v1607_v47 }
 0xc92   : > { %v1595_v49 = vpop.f32.mrf.mxu1 }
 0xc93   : > { %v2212_v49 = vld [vmem:[#allocation8 + $0x8] ss:$0 sm:$0xff] }
 0xc94   : > { %v2421_v50 = vpop.f32.mrf.mxu1 }
 0xc99   : > { %1389 = vrot.lane.b32.xlu1 %v3139_v6, %s2808_s14  ;;  %s2152_s14 = sshll.u32 %s378_s24, 3 }
 0xc9a   : > { %s380_s25 = scalar_lea.vmem [#allocation10], %s2152_s14 }
 0xc9b   : > { %s2040_s27 = sshll.u32 %s380_s25, 4  ;;  %s2041_s27 = int_to_ptr.vmem [resolvable:$true] %s2040_s27 }
 0xc9c   : > { %s2720_s22 = scalar_lea.vmem %s2041_s27, 128 }
 0xc9d   : > { %p2721_p9 = scmp.ne.s32.totalorder %s2041_s27, %s2720_s22 }
 0xc9f   : > { %p2722_p3 = pnand %p2721_p9, %p3274_p1 }
 0xca0   : > { %v1600_v51 = vpop.xlane.xlu0 %1599 }
 0xca1   : > { %v1610_v52 = vsub.f32 %v1445_v32, %v1600_v51  ;;  %p2723_p2 = pneg %p2722_p3 }
 0xca3   : > { %v1614_v53 = vmul.f32 1.442695, %v1610_v52 }
 0xca5   : > { %2596 = vpow2.f32 %v1614_v53 }
 0xcb2   : > { %v2597_v54 = vpop.eup %2596 }
 0xcb3   : > { %v1622_v55 = vsel %vm628_vm4, %v2597_v54, 0.0 }
 0xcbd   : > { %1623 = vadd.xlane.f32.xlu1 %v1622_v55 }
 0xd11   : > { %v1603_v56 = vpop.xlane.xlu1 %1602  ;;  %v1606_v57 = vpop.xlane.xlu0 %1605 }
 0xd12   : > { %v1611_v58 = vsub.f32 %v1494_v37, %v1603_v56  ;;  %v1612_v59 = vsub.f32 %v1543_v38, %v1606_v57 }
 0xd14   : > { %v1616_v60 = vmul.f32 1.442695, %v1611_v58  ;;  %v1618_v61 = vmul.f32 1.442695, %v1612_v59 }
 0xd15   : > { %v1390_v62 = vpop.permute.xlu1 %1389 }
 0xd16   : > { %2598 = vpow2.f32 %v1616_v60  ;;  %v1399_v63 = vpack.c.bf16 %v1390_v62, %v1390_v62  ;;  %v2572_v62 = vld [vmem:[#allocation5 + $0x18] sm:$0xff]  }
 0xd17   : > { %2600 = vpow2.f32 %v1618_v61 }
 0xd18   : > { %v1696_v0 = vsel %vm873_vm5, %v1399_v63, 0  ;;  %v2573_v63 = vld [vmem:[#allocation5 + $0x10] sm:$0xff]  }
 0xd19   : > { %2429 = vmatpush3.bf16.msra.mxu1 %v1696_v0  ;;  %v1609_v3 = vpop.xlane.xlu0 %1608 }
 0xd1a   : > { %v1613_v4 = vsub.f32 %v1592_v46, %v1609_v3  ;;  %2440 = vmatprep.subr.bf16.mxu1 %v2803_v1 }
 0xd1c   : > { %v1620_v5 = vmul.f32 1.442695, %v1613_v4 }
 0xd1e   : > { %2602 = vpow2.f32 %v1620_v5  ;;  %v2213_v5 = vld [vmem:[#allocation8 + $0xb] ss:$0 sm:$0xff] }
 0xd23   : > { %v2599_v7 = vpop.eup %2598 }
 0xd24   : > { %v2601_v8 = vpop.eup %2600  ;;  %v1625_v9 = vsel %vm628_vm4, %v2599_v7, 0.0 }
 0xd25   : > { %1626 = vadd.xlane.f32.xlu0 %v1625_v9  ;;  %v1628_v10 = vsel %vm628_vm4, %v2601_v8, 0.0 }
 0xd26   : > { %1629 = vadd.xlane.f32.xlu1 %v1628_v10 }
 0xd2b   : > { %v2603_v11 = vpop.eup %2602 }
 0xd2c   : > { %v1631_v12 = vsel %vm628_vm4, %v2603_v11, 0.0 }
 0xd2d   : > { %1632 = vadd.xlane.f32.xlu0 %v1631_v12  ;;  %v2574_v12 = vld [vmem:[#allocation7 + $0x18] sm:$0xff]  }
 0xd37   : > { %1395 = vrot.lane.b32.xlu1 %v3139_v6, %s3272_s28  ;;  %s2811_s28 = smov [#allocation10]  }
 0xd43   : > { %1392 = vrot.lane.b32.xlu0 %v3139_v6, %s3273_s21  ;;  %s2724_s21 = sshll.u32 %s2811_s28, 4  ;;  %s2725_s21 = int_to_ptr.vmem [resolvable:$false] %s2724_s21 }
 0xd44   : > { %s2726_s13 = scalar_lea.vmem %s2725_s21, 256  ;;  %p2727_p4 = scmp.lt.s32.totalorder %s2041_s27, %s2725_s21 }
 0xd45   : > { %p2728_p5 = scmp.lt.s32.totalorder %s2726_s13, %s2720_s22 }
 0xd46   : > { %v1624_v13 = vpop.xlane.xlu1 %1623 }
 0xd47   : > { %2604 = vrcp.f32 %v1624_v13  ;;  %v2575_v13 = vld [vmem:[#allocation7 + $0x10] sm:$0xff]   ;;  %p2729_p7 = por %p2728_p5, %p2727_p4 }
 0xd49   : > { %p2730_p8 = pnand %p2729_p7, %p2723_p2 }
 0xd54   : > { %v2605_v14 = vpop.eup %2604 }
 0xd55   : > { %v1638_v15 = vmul.f32 %v2605_v14, %v2597_v54  ;;  %v2215_v14 = vld [vmem:[#allocation8 + $0x9] ss:$0 sm:$0xff] }
 0xd57   : > { %v1642_v17 = vpack.c.bf16 %v1638_v15, %v1638_v15 }
 0xd59   : > { %2425 = vmatmul.mubr.msk.bf16.vlgmr.msra.gmra.mxu0 %vm628_vm4, %v1642_v17 }
 0xd5a   : > { %2436 = vmatprep.mubr.msk.bf16.mxu0 %vm2804_vm0, %v2803_v1 }
 0xdae   : > { %v1627_v18 = vpop.xlane.xlu0 %1626 }
 0xdaf   : > { %v1630_v19 = vpop.xlane.xlu1 %1629  ;;  %2606 = vrcp.f32 %v1627_v18 }
 0xdb0   : > { %2608 = vrcp.f32 %v1630_v19 }
 0xdb3   : > { %v1396_v16 = vpop.permute.xlu1 %1395 }
 0xdb4   : > { %v1401_v24 = vpack.c.bf16 %v1396_v16, %v1396_v16 }
 0xdb6   : > { %v1633_v20 = vpop.xlane.xlu0 %1632  ;;  %v1788_v31 = vsel %vm873_vm5, %v1401_v24, 0 }
 0xdb7   : > { %2610 = vrcp.f32 %v1633_v20 }
 0xdba   : > { %v1393_v21 = vpop.permute.xlu0 %1392 }
 0xdbb   : > { %v1400_v22 = vpack.c.bf16 %v1393_v21, %v1393_v21 }
 0xdbc   : > { %v2607_v6 = vpop.eup %2606 }
 0xdbd   : > { %v2609_v23 = vpop.eup %2608  ;;  %v1742_v25 = vsel %vm873_vm5, %v1400_v22, 0  ;;  %v1639_v26 = vmul.f32 %v2607_v6, %v2599_v7  ;;  %v2219_v22 = vld [vmem:[#allocation8 + $0xa] ss:$0 sm:$0xff] }
 0xdbe   : > { %2435 = vmatpush3.bf16.msra.mxu0 %v1742_v25  ;;  %v1640_v27 = vmul.f32 %v2609_v23, %v2601_v8  ;;  %v2214_v8 = vld [vmem:[#allocation8 + $0xc] ss:$0 sm:$0xff] }
 0xdbf   : > { %v1643_v28 = vpack.c.bf16 %v1639_v26, %v1639_v26  ;;  %2446 = vmatprep.subr.bf16.mxu0 %v2803_v1 }
 0xdc0   : > { %v1644_v29 = vpack.c.bf16 %v1640_v27, %v1640_v27 }
 0xdc1   : > { %2431 = vmatmul.mubr.msk.bf16.vlgmr.msra.gmra.mxu1 %vm628_vm4, %v1643_v28 }
 0xdc2   : > { %2437 = vmatmul.mubr.msk.bf16.vlgmr.msra.gmra.mxu0 %vm628_vm4, %v1644_v29  ;;  %2441 = vmatpush3.bf16.msra.mxu1 %v1788_v31 }
 0xdc3   : > { %2442 = vmatprep.mubr.msk.bf16.mxu1 %vm2804_vm0, %v2803_v1  ;;  %2450 = vmatprep.mubr.msk.bf16.mxu0 %vm2804_vm0, %v2803_v1 }
 0xdc4   : > { %v2611_v32 = vpop.eup %2610  ;;  %2454 = vmatprep.subr.bf16.mxu1 %v2803_v1  ;;  %2447 = vmatpush3.bf16.msra.mxu0 %v2572_v62 }
 0xdc5   : > { %v1641_v33 = vmul.f32 %v2611_v32, %v2603_v11  ;;  %2448 = vmatprep.subr.bf16.mxu0 %v2803_v1 }
 0xdc7   : > { %v1645_v34 = vpack.c.bf16 %v1641_v33, %v1641_v33 }
 0xdc8   : > { %2449 = vmatpush3.bf16.msra.mxu0 %v2573_v63 }
 0xdc9   : > { %2443 = vmatmul.mubr.msk.bf16.vlgmr.msra.gmra.mxu1 %vm628_vm4, %v1645_v34 }
 0xdca   : > { %2458 = vmatprep.mubr.msk.bf16.mxu1 %vm2804_vm0, %v2803_v1  ;;  %2455 = vmatpush3.bf16.msra.mxu1 %v2574_v12 }
 0xdcb   : > { %2456 = vmatprep.subr.bf16.mxu1 %v2803_v1 }
 0xdce   : > { %2457 = vmatpush3.bf16.msra.mxu1 %v2575_v13 }
 0xe19   : > { %v1686_v35 = vpop.f32.mrf.mxu0 }
 0xe1b   : > { %v2426_v36 = vpop.f32.mrf.mxu0 }
 0xe1d   : > { %v1689_v37 = vpop.f32.mrf.mxu0 }
 0xe1f   : > { %v2427_v38 = vpop.f32.mrf.mxu0 }
 0xe20   : > { %v2223_v38 = vld [vmem:[#allocation8 + $0xd] ss:$0 sm:$0xff] }
 0xe81   : > { %v1732_v39 = vpop.f32.mrf.mxu1 }
 0xe82   : > { %v1778_v40 = vpop.f32.mrf.mxu0  ;;  %v1830_v30 = vadd.f32 %v1732_v39, %v1686_v35 }
 0xe83   : > { %v2432_v41 = vpop.f32.mrf.mxu1 }
 0xe84   : > { %v2438_v42 = vpop.f32.mrf.mxu0  ;;  %v1831_v46 = vadd.f32 %v1830_v30, %v1778_v40  ;;  %v2224_v40 = vld [vmem:[#allocation8 + $0xe] ss:$0 sm:$0xff] }
 0xe85   : > { %v1735_v43 = vpop.f32.mrf.mxu1 }
 0xe86   : > { %v1781_v44 = vpop.f32.mrf.mxu0 }
 0xe87   : > { %v2433_v45 = vpop.f32.mrf.mxu1 }
 0xe88   : > { %v2439_v47 = vpop.f32.mrf.mxu0 }
 0xe89   : > { %v1824_v48 = vpop.f32.mrf.mxu1 }
 0xe8a   : > { %v1832_v50 = vadd.f32 %v1831_v46, %v1824_v48 }
 0xe8b   : > { %v2444_v51 = vpop.f32.mrf.mxu1 }
 0xe8c   : > { %v1839_v52 = vadd.f32 %v2212_v49, %v1832_v50 }
 0xe8d   : > { %v1827_v53 = vpop.f32.mrf.mxu1 }
 0xe8e   : > { %v1840_v54 = vadd.f32 %v1839_v52, %v3126_v2 }
 0xe8f   : > { %v2445_v55 = vpop.f32.mrf.mxu1 }
 0xe90   : > { %v1843_v56 = vsel %vm497_vm3, %v1840_v54, 0.0 }
 0xe91   : > { %1844 = vadd.xlane.f32.xlu1 %v1843_v56 }
 0xf1a   : > { %v1845_v57 = vpop.xlane.xlu1 %1844 }
 0xf1b   : > { %v1846_v58 = vmul.f32 0.03125, %v1845_v57 }
 0xf1d   : > { %v1847_v59 = vsub.f32 %v1840_v54, %v1846_v58 }
 0xf1f   : > { %v1848_v60 = vmul.f32 %v1847_v59, %v1847_v59 }
 0xf21   : > { %v1849_v61 = vsel %vm497_vm3, %v1848_v60, 0.0 }
 0xf22   : > { %1850 = vadd.xlane.f32.xlu0 %v1849_v61 }
 0xfab   : > { %v1851_v0 = vpop.xlane.xlu0 %1850 }
 0xfac   : > { %v1852_v3 = vmul.f32 0.03125, %v1851_v0 }
 0xfae   : > { %v1853_v2 = vadd.f32 1e-05, %v1852_v3 }
 0xfb0   : > { %2612 = vrsqrt.f32 %v1853_v2 }
 0xfbd   : > { %v2613_v4 = vpop.eup %2612 }
 0xfbe   : > { %v1855_v7 = vmul.f32 %v2613_v4, %v1847_v59 }
 0xfc0   : > { %v1860_v9 = vmul.f32 %v2213_v5, %v1855_v7 }
 0xfc2   : > { %v1865_v10 = vadd.f32 %v2214_v8, %v1860_v9 }
 0xfc4   : > { %v1866_v11 = vpack.c.bf16 %v1865_v10, %v1865_v10 }
 0xfc6   : > { %2451 = vmatmul.mubr.msk.bf16.vlgmr.msra.gmra.mxu0 %vm497_vm3, %v1866_v11 }
0x1086   : > { %v1926_v15 = vpop.f32.mrf.mxu0 }
0x1087   : > { %v1927_v17 = vadd.f32 %v2215_v14, %v1926_v15 }
0x1088   : > { %v2452_v18 = vpop.f32.mrf.mxu0 }
0x1089   : > { %v1932_v19 = vmax.f32 %v1927_v17, 0.0 }
0x108a   : > { %v1929_v20 = vpop.f32.mrf.mxu0 }
0x108b   : > { %v1933_v16 = vpack.c.bf16 %v1932_v19, %v1932_v19 }
0x108c   : > { %v2453_v21 = vpop.f32.mrf.mxu0 }
0x108d   : > { %2459 = vmatmul.mubr.msk.bf16.vlgmr.msra.gmra.mxu1 %vm497_vm3, %v1933_v16 }
0x114d   : > { %v1993_v6 = vpop.f32.mrf.mxu1 }
0x114e   : > { %v1994_v23 = vadd.f32 %v2219_v22, %v1993_v6 }
0x114f   : > { %v2460_v24 = vpop.f32.mrf.mxu1 }
0x1150   : > { %v1999_v25 = vadd.f32 %v1994_v23, %v1865_v10 }
0x1151   : > { %v1996_v26 = vpop.f32.mrf.mxu1 }
0x1152   : > { %v2002_v1 = vsel %vm497_vm3, %v1999_v25, 0.0 }
0x1153   : > { %2003 = vadd.xlane.f32.xlu0 %v2002_v1  ;;  %v2461_v27 = vpop.f32.mrf.mxu1 }
0x11dc   : > { %v2004_v28 = vpop.xlane.xlu0 %2003 }
0x11dd   : > { %v2005_v29 = vmul.f32 0.03125, %v2004_v28 }
0x11df   : > { %v2006_v31 = vsub.f32 %v1999_v25, %v2005_v29 }
0x11e1   : > { %v2007_v32 = vmul.f32 %v2006_v31, %v2006_v31 }
0x11e3   : > { %v2008_v33 = vsel %vm497_vm3, %v2007_v32, 0.0 }
0x11e4   : > { %2009 = vadd.xlane.f32.xlu1 %v2008_v33 }
0x126d   : > { %v2010_v34 = vpop.xlane.xlu1 %2009 }
0x126e   : > { %v2011_v35 = vmul.f32 0.03125, %v2010_v34 }
0x1270   : > { %v2012_v36 = vadd.f32 1e-05, %v2011_v35 }
0x1272   : > { %2614 = vrsqrt.f32 %v2012_v36 }
0x127f   : > { %v2615_v37 = vpop.eup %2614 }
0x1280   : > { %v2014_v39 = vmul.f32 %v2615_v37, %v2006_v31 }
0x1282   : > { %v2019_v41 = vmul.f32 %v2223_v38, %v2014_v39 }
0x1284   : > { %v2024_v30 = vadd.f32 %v2224_v40, %v2019_v41 }
0x1286   : > { %2025 = vst.msk [vmem:[%s380_s25] sm:$0xff] %vm497_vm3, %v2024_v30 }
0x1287   : > { %2733 = shalt.err (!%p2730_p8)
}
0x1288   : > { %s2734_s14 = scalar_lea.hbm %s2038_s17, 128  ;;  %s2738_s25 = scalar_lea.hbm %s3257_s9, 256 }
0x1289   : > { %p2735_p13 = scmp.ne.s32.totalorder %s2038_s17, %s2734_s14  ;;  %p2739_p6 = scmp.lt.s32.totalorder %s2038_s17, %s3257_s9 }
0x128a   : > { %p2740_p12 = scmp.lt.s32.totalorder %s2738_s25, %s2734_s14 }
0x128b   : > { %p2736_p11 = pnand %p2735_p13, %p3274_p1 }
0x128c   : > { %p2741_p10 = por %p2740_p12, %p2739_p6 }
0x128d   : > { %p2737_p0 = pneg %p2736_p11 }
0x128f   : > { %p2742_p9 = pnand %p2741_p10, %p2737_p0 }
0x1291   : > { %2745 = shalt.err (!%p2742_p9)
}
0x1292   : > { %2478 = dma.vmem_to_hbm [thread:$0]  (%p3274_p1), %s2041_s27, 128, %s2038_s17, %s2027_s16  }
0x1293 PF: > { %p2505_p3 = scmp.ge.s32.totalorder %s2792_s12, 2  ;;  %s2052_s22 = sand.u32 1, %s2780_s30  }
0x1294   : > { %p3275_p2 = scmp.ne.s32.totalorder %s3263_s20, 0  ;;  %s2053_s28 = scalar_lea.sflag [#allocation4], %s2052_s22 }
0x1296   : > { %p2494_p4 = pnand %p2505_p3, %p3275_p2 }
0x1298   : > { %p2495_p5 = pneg %p2494_p4 }
0x129a   : > { %2775 = dma.done.wait (%p2495_p5), %s2053_s28, 128  }
0x129b   : > { %2777 = vsyncadd (%p2495_p5), %s2053_s28, 4294967168  ;;  %p22_p7 = scmp.ge.s32.totalorder %s2887_s15, 4   ;;  %s3276_s30 = smov %s2784_s10 }
0x129c   : > { %s3277_s10 = smov %s2788_s11  ;;  %s3278_s11 = smov %s2898_s18 }
0x129d   : > { %s3279_s12 = smov %s2887_s15  ;;  %24 = sbr.rel (!%p22_p7) target bundleno = 6 (0x6), region = 114 }
0x12a2   :  { %2058 = vsyncpa [#allocation3], 1 }
0x12a3   :  { %2060 = vsyncpa [#allocation3 + $0x1], 1 }
0x12a4   :  { %2061 = vsyncpa [#allocation6], 1 }
0x12a5   :  { %2062 = vsyncpa [#allocation9], 1 }
0x12a6   :  { %2063 = vsyncpa [#allocation4], 1 }
0x12a7   :  { %2065 = vsyncpa [#allocation4 + $0x1], 1 }

</bundles_post_ra>
